<compile_context>
chip_gen: v7x
topology: tpu7x:2x2x1
jax: 0.10.0
libtpu: 0.0.40
codegen_flags: <defaults>
</compile_context>

<pallas_src>
import jax
import jax.numpy as jnp
from jax import lax
from jax.experimental import pallas as pl
from jax.experimental.pallas import tpu as pltpu

BN_EPS = 1e-5
VMEM_LIMIT = 32 * 1024 * 1024  # safe on v5e/v6e (128 MiB) and v7x (64 MiB physical)


def _pick_pixel_tile(n):
    for t in (1024, 512, 256, 128):
        if n % t == 0:
            return t
    return n


# ---------------- pass 1: conv1x1 + BN2d batch statistics -------------------
def _stats_kernel(x_ref, wc_ref, ssum_ref, ssq_ref):
    j = pl.program_id(1)
    # 1x1 conv == channel matmul (MXU, bf16 operands, f32 accumulation)
    y = jnp.dot(wc_ref[...].astype(jnp.bfloat16),
                x_ref[...].astype(jnp.bfloat16),
                preferred_element_type=jnp.float32)              # (D, TN)

    @pl.when(j == 0)
    def _():
        ssum_ref[...] = jnp.zeros_like(ssum_ref)
        ssq_ref[...] = jnp.zeros_like(ssq_ref)

    ssum_ref[...] += jnp.sum(y, axis=1, keepdims=True)           # (D, 1)
    ssq_ref[...] += jnp.sum(y * y, axis=1, keepdims=True)        # (D, 1)


# ------ pass 2: BN2d + ReLU, scaled-L2 softmax assignment, aggregation ------
def _aggregate_kernel(x_ref, wc_ref, sc2_ref, bs2_ref, cw_ref, s2_ref, e_ref):
    j = pl.program_id(1)
    y = jnp.dot(wc_ref[...].astype(jnp.bfloat16),
                x_ref[...].astype(jnp.bfloat16),
                preferred_element_type=jnp.float32)              # (D, TN)
    y = jnp.maximum(y * sc2_ref[...] + bs2_ref[...], 0.0)        # BN2d (batch stats) + ReLU

    cw = cw_ref[...]                                             # (K, D)
    y16 = y.astype(jnp.bfloat16)

    # scaled L2: SL[k,n] = s_k^2 * (||y_n||^2 - 2 (C @ y)[k,n] + ||c_k||^2)
    ynorm = jnp.sum(y * y, axis=0, keepdims=True)                # (1, TN)
    cnorm = jnp.sum(cw * cw, axis=1, keepdims=True)              # (K, 1)
    cy = jnp.dot(cw.astype(jnp.bfloat16), y16,
                 preferred_element_type=jnp.float32)             # (K, TN)
    sl = s2_ref[...] * (ynorm - 2.0 * cy + cnorm)                # (K, TN)

    # softmax over codes (sublane axis); divide on the EUP via approx reciprocal
    m = jnp.max(sl, axis=0, keepdims=True)
    p = jnp.exp(sl - m)
    a = p * pl.reciprocal(jnp.sum(p, axis=0, keepdims=True), approx=True)

    # E_partial[k,d] = sum_n a[k,n] * y[d,n] - (sum_n a[k,n]) * C[k,d]
    aty = lax.dot_general(a.astype(jnp.bfloat16), y16,
                          (((1,), (1,)), ((), ())),
                          preferred_element_type=jnp.float32)    # (K, D)
    asum = jnp.sum(a, axis=1, keepdims=True)                     # (K, 1)  (XLU, no MXU push)

    @pl.when(j == 0)
    def _():
        e_ref[...] = jnp.zeros_like(e_ref)

    e_ref[...] += aty - asum * cw


# ------ pass 3 (tiny): BN1d + ReLU + mean over codes + batched fc/se heads ---
def _tail_kernel(e_ref, g1_ref, b1_ref, fcw_ref, fcb_ref, sew_ref, seb_ref,
                 gamma_ref, out1_ref):
    B, K, D = e_ref.shape
    cnt = float(B * D)
    # BatchNorm1d(K) training statistics: per code k over (B, D)
    mean_k = sum(jnp.sum(e_ref[b], axis=1, keepdims=True)
                 for b in range(B)) / cnt                                     # (K, 1)
    var_k = sum(jnp.sum((e_ref[b] - mean_k) ** 2, axis=1, keepdims=True)
                for b in range(B)) / cnt                                      # (K, 1)
    inv_k = lax.rsqrt(var_k + BN_EPS)
    g1 = g1_ref[...]                                                          # (K, 1)
    b1 = b1_ref[...]                                                          # (K, 1)

    # en_b = mean_k(ReLU(BN1d(E_b))), stacked into a single (B, D) slab
    en = jnp.concatenate(
        [jnp.sum(jnp.maximum((e_ref[b] - mean_k) * inv_k * g1 + b1, 0.0),
                 axis=0, keepdims=True)
         for b in range(B)],
        axis=0) * (1.0 / K)                                                   # (B, D)

    dn = (((1,), (1,)), ((), ()))          # contract with Linear's input dim
    gamma_ref[...] = jax.nn.sigmoid(
        lax.dot_general(en, fcw_ref[...], dn, preferred_element_type=jnp.float32)
        + fcb_ref[...])                                                       # (B, D)
    out1_ref[...] = (lax.dot_general(en, sew_ref[...], dn,
                                     preferred_element_type=jnp.float32)
                     + seb_ref[...])                                          # (B, NC)


# ---------------- pass 4: per-channel gate over pixel tiles ------------------
def _gate_kernel(x_ref, g_ref, out_ref):
    xb = x_ref[...]                                              # (C, TN)
    out_ref[...] = jnp.maximum(xb * (1.0 + g_ref[...]), 0.0)     # relu(x + x*gamma)


def init_params(key, in_channels, ncodes, num_classes):
    D, K, NC = in_channels, ncodes, num_classes
    ks = jax.random.split(key, 7)
    std1 = 1.0 / float(K * D) ** 0.5
    bound = 1.0 / float(D) ** 0.5
    return dict(
        conv_w=jax.random.normal(ks[0], (D, D), jnp.float32) * (1.0 / D ** 0.5),  # (out, in)
        bn2_g=jnp.ones((D,), jnp.float32),
        bn2_b=jnp.zeros((D,), jnp.float32),
        codewords=jax.random.uniform(ks[1], (K, D), jnp.float32, -std1, std1),
        enc_scale=jax.random.uniform(ks[2], (K,), jnp.float32, -1.0, 0.0),
        bn1_g=jnp.ones((K,), jnp.float32),
        bn1_b=jnp.zeros((K,), jnp.float32),
        fc_w=jax.random.uniform(ks[3], (D, D), jnp.float32, -bound, bound),       # (out, in)
        fc_b=jax.random.uniform(ks[4], (D,), jnp.float32, -bound, bound),
        se_w=jax.random.uniform(ks[5], (NC, D), jnp.float32, -bound, bound),      # (out, in)
        se_b=jax.random.uniform(ks[6], (NC,), jnp.float32, -bound, bound),
    )


@jax.jit
def enc_module_forward(x, params):
    B, C, H, W = x.shape
    N = H * W
    D = C
    K = params["codewords"].shape[0]
    NC = params["se_w"].shape[0]

    TN = _pick_pixel_tile(N)
    NT = N // TN

    x3 = x.reshape(B, C, N).astype(jnp.float32)          # free reshape, stays NCHW
    conv_w = params["conv_w"].astype(jnp.float32)        # (D_out, C_in)

    x_spec = pl.BlockSpec((None, C, TN), lambda b, j: (b, 0, j))
    wc_spec = pl.BlockSpec((D, C), lambda b, j: (0, 0))
    col_d_spec = pl.BlockSpec((D, 1), lambda b, j: (0, 0))
    col_k_spec = pl.BlockSpec((K, 1), lambda b, j: (0, 0))
    cw_spec = pl.BlockSpec((K, D), lambda b, j: (0, 0))

    tiled_params = pltpu.CompilerParams(
        dimension_semantics=("parallel", "arbitrary"),
        vmem_limit_bytes=VMEM_LIMIT)

    # ---- pass 1: BN2d batch statistics (per-b partials, reduced below) ----
    ssum, ssq = pl.pallas_call(
        _stats_kernel,
        grid=(B, NT),
        in_specs=[x_spec, wc_spec],
        out_specs=(pl.BlockSpec((None, D, 1), lambda b, j: (b, 0, 0)),
                   pl.BlockSpec((None, D, 1), lambda b, j: (b, 0, 0))),
        out_shape=(jax.ShapeDtypeStruct((B, D, 1), jnp.float32),
                   jax.ShapeDtypeStruct((B, D, 1), jnp.float32)),
        compiler_params=tiled_params,
    )(x3, conv_w)

    cnt = float(B * N)
    mean2 = jnp.sum(ssum, axis=(0, 2)) / cnt                                # (D,)
    var2 = jnp.maximum(jnp.sum(ssq, axis=(0, 2)) / cnt - mean2 * mean2, 0.0)
    sc2 = params["bn2_g"] * lax.rsqrt(var2 + BN_EPS)                        # (D,)
    bs2 = params["bn2_b"] - mean2 * sc2                                     # (D,)
    s2 = params["enc_scale"] * params["enc_scale"]                          # (K,)

    # ---- pass 2: softmax assignment + aggregation into E (B, K, D) ----
    e = pl.pallas_call(
        _aggregate_kernel,
        grid=(B, NT),
        in_specs=[x_spec, wc_spec, col_d_spec, col_d_spec, cw_spec, col_k_spec],
        out_specs=pl.BlockSpec((None, K, D), lambda b, j: (b, 0, 0)),
        out_shape=jax.ShapeDtypeStruct((B, K, D), jnp.float32),
        compiler_params=tiled_params,
    )(x3, conv_w, sc2.reshape(D, 1), bs2.reshape(D, 1),
      params["codewords"], s2.reshape(K, 1))

    # ---- pass 3: tiny tail (BN1d + mean over codes + fc / se heads) ----
    vmem = pl.BlockSpec(memory_space=pltpu.MemorySpace.VMEM)
    gamma, out1 = pl.pallas_call(
        _tail_kernel,
        in_specs=[vmem] * 7,
        out_specs=(vmem, vmem),
        out_shape=(jax.ShapeDtypeStruct((B, D), jnp.float32),
                   jax.ShapeDtypeStruct((B, NC), jnp.float32)),
    )(e,
      params["bn1_g"].reshape(K, 1), params["bn1_b"].reshape(K, 1),
      params["fc_w"], params["fc_b"].reshape(1, D),
      params["se_w"], params["se_b"].reshape(1, NC))

    # ---- pass 4: apply the per-channel gate to x ----
    out0 = pl.pallas_call(
        _gate_kernel,
        grid=(B, NT),
        in_specs=[x_spec, pl.BlockSpec((None, D, 1), lambda b, j: (b, 0, 0))],
        out_specs=pl.BlockSpec((None, C, TN), lambda b, j: (b, 0, j)),
        out_shape=jax.ShapeDtypeStruct((B, C, N), jnp.float32),
        compiler_params=pltpu.CompilerParams(
            dimension_semantics=("parallel", "parallel"),
            vmem_limit_bytes=VMEM_LIMIT),
    )(x3, gamma.reshape(B, D, 1))

    return out0.reshape(B, C, H, W), out1


if __name__ == "__main__":
    B, C, H, W = 2, 32, 16, 16
    ncodes, num_classes = 32, 8

    key = jax.random.PRNGKey(0)
    kx, kp = jax.random.split(key)
    x = jax.random.normal(kx, (B, C, H, W), jnp.float32)
    params = init_params(kp, C, ncodes, num_classes)

    out0, out1 = enc_module_forward(x, params)
    jax.block_until_ready((out0, out1))

    assert out0.shape == (B, C, H, W), out0.shape
    assert out1.shape == (B, num_classes), out1.shape
    assert bool(jnp.all(jnp.isfinite(out0))) and bool(jnp.all(jnp.isfinite(out1)))
    print("KERNEL_OK")
</pallas_src>

<mosaic_0001>
module attributes {stable_mosaic.version = 11 : i64} {
  func.func @_stats_kernel(%arg0: i32, %arg1: i32, %arg2: memref<1x32x256xf32, #tpu.memory_space<vmem>>, %arg3: memref<32x32xf32, #tpu.memory_space<vmem>>, %arg4: memref<1x32x1xf32, #tpu.memory_space<vmem>>, %arg5: memref<1x32x1xf32, #tpu.memory_space<vmem>>) attributes {dimension_semantics = [#tpu.dimension_semantics<parallel>, #tpu.dimension_semantics<arbitrary>], iteration_bounds = array<i64: 2, 1>, scalar_prefetch = 0 : i64, scratch_operands = 0 : i64, tpu.core_type = #tpu.core_type<tc>, window_params = [{transform_indices = @transform_0, window_bounds = array<i64: 1, 32, 256>}, {pipeline_mode = #tpu.pipeline_mode<synchronous>, transform_indices = @transform_1, window_bounds = array<i64: 32, 32>}, {transform_indices = @transform_2, window_bounds = array<i64: 1, 32, 1>}, {transform_indices = @transform_3, window_bounds = array<i64: 1, 32, 1>}]} {
    %c0 = arith.constant 0 : index
    %c0_0 = arith.constant 0 : index
    %0 = vector.load %arg3[%c0, %c0_0] : memref<32x32xf32, #tpu.memory_space<vmem>>, vector<32x32xf32>
    %1 = arith.truncf %0 : vector<32x32xf32> to vector<32x32xbf16>
    %c0_1 = arith.constant 0 : index
    %c0_2 = arith.constant 0 : index
    %c0_3 = arith.constant 0 : index
    %2 = vector.load %arg2[%c0_1, %c0_2, %c0_3] : memref<1x32x256xf32, #tpu.memory_space<vmem>>, vector<1x32x256xf32>
    %3 = vector.shape_cast %2 : vector<1x32x256xf32> to vector<32x256xf32>
    %4 = arith.truncf %3 : vector<32x256xf32> to vector<32x256xbf16>
    %cst = arith.constant dense<0.000000e+00> : vector<32x256xf32>
    %5 = tpu.matmul %1, %4, %cst {dimension_numbers = #tpu.dot_dimension_numbers<[1], [0], [0], [1], [0, 0, 1, 1], [], []>} : vector<32x32xbf16>, vector<32x256xbf16>, vector<32x256xf32> -> vector<32x256xf32>
    %c0_i32 = arith.constant 0 : i32
    %6 = arith.cmpi eq, %arg1, %c0_i32 : i32
    %7 = arith.extui %6 : i1 to i32
    %c0_i32_4 = arith.constant 0 : i32
    %8 = arith.cmpi ne, %7, %c0_i32_4 : i32
    scf.if %8 {
      %cst_19 = arith.constant 0.000000e+00 : f32
      %26 = vector.broadcast %cst_19 : f32 to vector<32x1xf32>
      %c0_20 = arith.constant 0 : index
      %c0_21 = arith.constant 0 : index
      %c0_22 = arith.constant 0 : index
      %27 = vector.load %arg4[%c0_20, %c0_21, %c0_22] : memref<1x32x1xf32, #tpu.memory_space<vmem>>, vector<1x32x1xf32>
      %28 = vector.shape_cast %27 : vector<1x32x1xf32> to vector<32x1xf32>
      %29 = vector.shape_cast %26 : vector<32x1xf32> to vector<1x32x1xf32>
      tpu.vector_store %arg4[%c0_20, %c0_21, %c0_22], %29 {strides = array<i32>} : memref<1x32x1xf32, #tpu.memory_space<vmem>>, vector<1x32x1xf32>,
      %cst_23 = arith.constant 0.000000e+00 : f32
      %30 = vector.broadcast %cst_23 : f32 to vector<32x1xf32>
      %c0_24 = arith.constant 0 : index
      %c0_25 = arith.constant 0 : index
      %c0_26 = arith.constant 0 : index
      %31 = vector.load %arg5[%c0_24, %c0_25, %c0_26] : memref<1x32x1xf32, #tpu.memory_space<vmem>>, vector<1x32x1xf32>
      %32 = vector.shape_cast %31 : vector<1x32x1xf32> to vector<32x1xf32>
      %33 = vector.shape_cast %30 : vector<32x1xf32> to vector<1x32x1xf32>
      tpu.vector_store %arg5[%c0_24, %c0_25, %c0_26], %33 {strides = array<i32>} : memref<1x32x1xf32, #tpu.memory_space<vmem>>, vector<1x32x1xf32>,
    } else {
    }
    %c0_5 = arith.constant 0 : index
    %c0_6 = arith.constant 0 : index
    %c0_7 = arith.constant 0 : index
    %9 = vector.load %arg4[%c0_5, %c0_6, %c0_7] : memref<1x32x1xf32, #tpu.memory_space<vmem>>, vector<1x32x1xf32>
    %10 = vector.shape_cast %9 : vector<1x32x1xf32> to vector<32x1xf32>
    %cst_8 = arith.constant dense<0.000000e+00> : vector<32xf32>
    %11 = vector.multi_reduction <add>, %5, %cst_8 [1] : vector<32x256xf32> to vector<32xf32>
    %12 = vector.shape_cast %11 : vector<32xf32> to vector<32x1xf32>
    %13 = arith.addf %10, %12 : vector<32x1xf32>
    %c0_9 = arith.constant 0 : index
    %c0_10 = arith.constant 0 : index
    %c0_11 = arith.constant 0 : index
    %14 = vector.load %arg4[%c0_9, %c0_10, %c0_11] : memref<1x32x1xf32, #tpu.memory_space<vmem>>, vector<1x32x1xf32>
    %15 = vector.shape_cast %14 : vector<1x32x1xf32> to vector<32x1xf32>
    %16 = vector.shape_cast %13 : vector<32x1xf32> to vector<1x32x1xf32>
    tpu.vector_store %arg4[%c0_9, %c0_10, %c0_11], %16 {strides = array<i32>} : memref<1x32x1xf32, #tpu.memory_space<vmem>>, vector<1x32x1xf32>,
    %c0_12 = arith.constant 0 : index
    %c0_13 = arith.constant 0 : index
    %c0_14 = arith.constant 0 : index
    %17 = vector.load %arg5[%c0_12, %c0_13, %c0_14] : memref<1x32x1xf32, #tpu.memory_space<vmem>>, vector<1x32x1xf32>
    %18 = vector.shape_cast %17 : vector<1x32x1xf32> to vector<32x1xf32>
    %19 = arith.mulf %5, %5 : vector<32x256xf32>
    %cst_15 = arith.constant dense<0.000000e+00> : vector<32xf32>
    %20 = vector.multi_reduction <add>, %19, %cst_15 [1] : vector<32x256xf32> to vector<32xf32>
    %21 = vector.shape_cast %20 : vector<32xf32> to vector<32x1xf32>
    %22 = arith.addf %18, %21 : vector<32x1xf32>
    %c0_16 = arith.constant 0 : index
    %c0_17 = arith.constant 0 : index
    %c0_18 = arith.constant 0 : index
    %23 = vector.load %arg5[%c0_16, %c0_17, %c0_18] : memref<1x32x1xf32, #tpu.memory_space<vmem>>, vector<1x32x1xf32>
    %24 = vector.shape_cast %23 : vector<1x32x1xf32> to vector<32x1xf32>
    %25 = vector.shape_cast %22 : vector<32x1xf32> to vector<1x32x1xf32>
    tpu.vector_store %arg5[%c0_16, %c0_17, %c0_18], %25 {strides = array<i32>} : memref<1x32x1xf32, #tpu.memory_space<vmem>>, vector<1x32x1xf32>,
    return
  }
  func.func @transform_0(%arg0: i32, %arg1: i32) -> (i32, i32, i32) {
    %c0_i32 = arith.constant 0 : i32
    %c0_i32_0 = arith.constant 0 : i32
    return %arg0, %c0_i32, %arg1 : i32, i32, i32
  }
  func.func @transform_1(%arg0: i32, %arg1: i32) -> (i32, i32) {
    %c0_i32 = arith.constant 0 : i32
    %c0_i32_0 = arith.constant 0 : i32
    %c0_i32_1 = arith.constant 0 : i32
    return %c0_i32, %c0_i32_0 : i32, i32
  }
  func.func @transform_2(%arg0: i32, %arg1: i32) -> (i32, i32, i32) {
    %c0_i32 = arith.constant 0 : i32
    %c0_i32_0 = arith.constant 0 : i32
    %c0_i32_1 = arith.constant 0 : i32
    return %arg0, %c0_i32, %c0_i32_0 : i32, i32, i32
  }
  func.func @transform_3(%arg0: i32, %arg1: i32) -> (i32, i32, i32) {
    %c0_i32 = arith.constant 0 : i32
    %c0_i32_0 = arith.constant 0 : i32
    %c0_i32_1 = arith.constant 0 : i32
    return %arg0, %c0_i32, %c0_i32_0 : i32, i32, i32
  }
}

module attributes {stable_mosaic.version = 11 : i64} {
  func.func @_tail_kernel(%arg0: memref<2x32x32xf32, #tpu.memory_space<vmem>>, %arg1: memref<32x1xf32, #tpu.memory_space<vmem>>, %arg2: memref<32x1xf32, #tpu.memory_space<vmem>>, %arg3: memref<32x32xf32, #tpu.memory_space<vmem>>, %arg4: memref<1x32xf32, #tpu.memory_space<vmem>>, %arg5: memref<8x32xf32, #tpu.memory_space<vmem>>, %arg6: memref<1x8xf32, #tpu.memory_space<vmem>>, %arg7: memref<2x32xf32, #tpu.memory_space<vmem>>, %arg8: memref<2x8xf32, #tpu.memory_space<vmem>>) attributes {dimension_semantics = [], scalar_prefetch = 0 : i64, scratch_operands = 0 : i64, tpu.core_type = #tpu.core_type<tc>} {
    %c0 = arith.constant 0 : index
    %c0_0 = arith.constant 0 : index
    %c0_1 = arith.constant 0 : index
    %0 = vector.load %arg0[%c0, %c0_0, %c0_1] : memref<2x32x32xf32, #tpu.memory_space<vmem>>, vector<1x32x32xf32>
    %1 = vector.shape_cast %0 : vector<1x32x32xf32> to vector<32x32xf32>
    %cst = arith.constant dense<0.000000e+00> : vector<32xf32>
    %2 = vector.multi_reduction <add>, %1, %cst [1] : vector<32x32xf32> to vector<32xf32>
    %3 = vector.shape_cast %2 : vector<32xf32> to vector<32x1xf32>
    %cst_2 = arith.constant 0.000000e+00 : f32
    %4 = vector.broadcast %cst_2 : f32 to vector<32x1xf32>
    %5 = arith.addf %4, %3 : vector<32x1xf32>
    %c1 = arith.constant 1 : index
    %c0_3 = arith.constant 0 : index
    %c0_4 = arith.constant 0 : index
    %6 = vector.load %arg0[%c1, %c0_3, %c0_4] : memref<2x32x32xf32, #tpu.memory_space<vmem>>, vector<1x32x32xf32>
    %7 = vector.shape_cast %6 : vector<1x32x32xf32> to vector<32x32xf32>
    %cst_5 = arith.constant dense<0.000000e+00> : vector<32xf32>
    %8 = vector.multi_reduction <add>, %7, %cst_5 [1] : vector<32x32xf32> to vector<32xf32>
    %9 = vector.shape_cast %8 : vector<32xf32> to vector<32x1xf32>
    %10 = arith.addf %5, %9 : vector<32x1xf32>
    %cst_6 = arith.constant 6.400000e+01 : f32
    %11 = vector.broadcast %cst_6 : f32 to vector<32x1xf32>
    %12 = arith.divf %10, %11 : vector<32x1xf32>
    %c0_7 = arith.constant 0 : index
    %c0_8 = arith.constant 0 : index
    %c0_9 = arith.constant 0 : index
    %13 = vector.load %arg0[%c0_7, %c0_8, %c0_9] : memref<2x32x32xf32, #tpu.memory_space<vmem>>, vector<1x32x32xf32>
    %14 = vector.shape_cast %13 : vector<1x32x32xf32> to vector<32x32xf32>
    %15 = vector.broadcast %12 : vector<32x1xf32> to vector<32x32xf32>
    %16 = arith.subf %14, %15 : vector<32x32xf32>
    %17 = arith.mulf %16, %16 : vector<32x32xf32>
    %cst_10 = arith.constant dense<0.000000e+00> : vector<32xf32>
    %18 = vector.multi_reduction <add>, %17, %cst_10 [1] : vector<32x32xf32> to vector<32xf32>
    %19 = vector.shape_cast %18 : vector<32xf32> to vector<32x1xf32>
    %cst_11 = arith.constant 0.000000e+00 : f32
    %20 = vector.broadcast %cst_11 : f32 to vector<32x1xf32>
    %21 = arith.addf %20, %19 : vector<32x1xf32>
    %c1_12 = arith.constant 1 : index
    %c0_13 = arith.constant 0 : index
    %c0_14 = arith.constant 0 : index
    %22 = vector.load %arg0[%c1_12, %c0_13, %c0_14] : memref<2x32x32xf32, #tpu.memory_space<vmem>>, vector<1x32x32xf32>
    %23 = vector.shape_cast %22 : vector<1x32x32xf32> to vector<32x32xf32>
    %24 = vector.broadcast %12 : vector<32x1xf32> to vector<32x32xf32>
    %25 = arith.subf %23, %24 : vector<32x32xf32>
    %26 = arith.mulf %25, %25 : vector<32x32xf32>
    %cst_15 = arith.constant dense<0.000000e+00> : vector<32xf32>
    %27 = vector.multi_reduction <add>, %26, %cst_15 [1] : vector<32x32xf32> to vector<32xf32>
    %28 = vector.shape_cast %27 : vector<32xf32> to vector<32x1xf32>
    %29 = arith.addf %21, %28 : vector<32x1xf32>
    %cst_16 = arith.constant 6.400000e+01 : f32
    %30 = vector.broadcast %cst_16 : f32 to vector<32x1xf32>
    %31 = arith.divf %29, %30 : vector<32x1xf32>
    %cst_17 = arith.constant 9.99999974E-6 : f32
    %32 = vector.broadcast %cst_17 : f32 to vector<32x1xf32>
    %33 = arith.addf %31, %32 : vector<32x1xf32>
    %34 = math.rsqrt %33 : vector<32x1xf32>
    %c0_18 = arith.constant 0 : index
    %c0_19 = arith.constant 0 : index
    %35 = vector.load %arg1[%c0_18, %c0_19] : memref<32x1xf32, #tpu.memory_space<vmem>>, vector<32x1xf32>
    %c0_20 = arith.constant 0 : index
    %c0_21 = arith.constant 0 : index
    %36 = vector.load %arg2[%c0_20, %c0_21] : memref<32x1xf32, #tpu.memory_space<vmem>>, vector<32x1xf32>
    %c0_22 = arith.constant 0 : index
    %c0_23 = arith.constant 0 : index
    %c0_24 = arith.constant 0 : index
    %37 = vector.load %arg0[%c0_22, %c0_23, %c0_24] : memref<2x32x32xf32, #tpu.memory_space<vmem>>, vector<1x32x32xf32>
    %38 = vector.shape_cast %37 : vector<1x32x32xf32> to vector<32x32xf32>
    %39 = vector.broadcast %12 : vector<32x1xf32> to vector<32x32xf32>
    %40 = arith.subf %38, %39 : vector<32x32xf32>
    %41 = vector.broadcast %34 : vector<32x1xf32> to vector<32x32xf32>
    %42 = arith.mulf %40, %41 : vector<32x32xf32>
    %43 = vector.broadcast %35 : vector<32x1xf32> to vector<32x32xf32>
    %44 = arith.mulf %42, %43 : vector<32x32xf32>
    %45 = vector.broadcast %36 : vector<32x1xf32> to vector<32x32xf32>
    %46 = arith.addf %44, %45 : vector<32x32xf32>
    %cst_25 = arith.constant 0.000000e+00 : f32
    %47 = vector.broadcast %cst_25 : f32 to vector<32x32xf32>
    %48 = arith.maximumf %46, %47 : vector<32x32xf32>
    %cst_26 = arith.constant dense<0.000000e+00> : vector<32xf32>
    %49 = vector.multi_reduction <add>, %48, %cst_26 [0] : vector<32x32xf32> to vector<32xf32>
    %50 = vector.shape_cast %49 : vector<32xf32> to vector<1x32xf32>
    %c1_27 = arith.constant 1 : index
    %c0_28 = arith.constant 0 : index
    %c0_29 = arith.constant 0 : index
    %51 = vector.load %arg0[%c1_27, %c0_28, %c0_29] : memref<2x32x32xf32, #tpu.memory_space<vmem>>, vector<1x32x32xf32>
    %52 = vector.shape_cast %51 : vector<1x32x32xf32> to vector<32x32xf32>
    %53 = vector.broadcast %12 : vector<32x1xf32> to vector<32x32xf32>
    %54 = arith.subf %52, %53 : vector<32x32xf32>
    %55 = vector.broadcast %34 : vector<32x1xf32> to vector<32x32xf32>
    %56 = arith.mulf %54, %55 : vector<32x32xf32>
    %57 = vector.broadcast %35 : vector<32x1xf32> to vector<32x32xf32>
    %58 = arith.mulf %56, %57 : vector<32x32xf32>
    %59 = vector.broadcast %36 : vector<32x1xf32> to vector<32x32xf32>
    %60 = arith.addf %58, %59 : vector<32x32xf32>
    %cst_30 = arith.constant 0.000000e+00 : f32
    %61 = vector.broadcast %cst_30 : f32 to vector<32x32xf32>
    %62 = arith.maximumf %60, %61 : vector<32x32xf32>
    %cst_31 = arith.constant dense<0.000000e+00> : vector<32xf32>
    %63 = vector.multi_reduction <add>, %62, %cst_31 [0] : vector<32x32xf32> to vector<32xf32>
    %64 = vector.shape_cast %63 : vector<32xf32> to vector<1x32xf32>
    %65 = tpu.concatenate %50, %64 in 0 : vector<1x32xf32>, vector<1x32xf32> -> vector<2x32xf32>
    %cst_32 = arith.constant 3.125000e-02 : f32
    %66 = vector.broadcast %cst_32 : f32 to vector<2x32xf32>
    %67 = arith.mulf %65, %66 : vector<2x32xf32>
    %c0_33 = arith.constant 0 : index
    %c0_34 = arith.constant 0 : index
    %68 = vector.load %arg3[%c0_33, %c0_34] : memref<32x32xf32, #tpu.memory_space<vmem>>, vector<32x32xf32>
    %cst_35 = arith.constant dense<0.000000e+00> : vector<2x32xf32>
    %69 = tpu.matmul %67, %68, %cst_35 {dimension_numbers = #tpu.dot_dimension_numbers<[1], [1], [0], [0], [0, 0, 1, 0], [], []>} : vector<2x32xf32>, vector<32x32xf32>, vector<2x32xf32> -> vector<2x32xf32>
    %c0_36 = arith.constant 0 : index
    %c0_37 = arith.constant 0 : index
    %70 = vector.load %arg4[%c0_36, %c0_37] : memref<1x32xf32, #tpu.memory_space<vmem>>, vector<1x32xf32>
    %71 = vector.broadcast %70 : vector<1x32xf32> to vector<2x32xf32>
    %72 = arith.addf %69, %71 : vector<2x32xf32>
    %73 = arith.negf %72 : vector<2x32xf32>
    %74 = math.exp %73 : vector<2x32xf32>
    %cst_38 = arith.constant 1.000000e+00 : f32
    %75 = vector.broadcast %cst_38 : f32 to vector<2x32xf32>
    %76 = arith.addf %75, %74 : vector<2x32xf32>
    %77 = arith.divf %75, %76 : vector<2x32xf32>
    %c0_39 = arith.constant 0 : index
    %c0_40 = arith.constant 0 : index
    %78 = vector.load %arg7[%c0_39, %c0_40] : memref<2x32xf32, #tpu.memory_space<vmem>>, vector<2x32xf32>
    tpu.vector_store %arg7[%c0_39, %c0_40], %77 {strides = array<i32>} : memref<2x32xf32, #tpu.memory_space<vmem>>, vector<2x32xf32>,
    %c0_41 = arith.constant 0 : index
    %c0_42 = arith.constant 0 : index
    %79 = vector.load %arg5[%c0_41, %c0_42] : memref<8x32xf32, #tpu.memory_space<vmem>>, vector<8x32xf32>
    %cst_43 = arith.constant dense<0.000000e+00> : vector<2x8xf32>
    %80 = tpu.matmul %67, %79, %cst_43 {dimension_numbers = #tpu.dot_dimension_numbers<[1], [1], [0], [0], [0, 0, 1, 0], [], []>} : vector<2x32xf32>, vector<8x32xf32>, vector<2x8xf32> -> vector<2x8xf32>
    %c0_44 = arith.constant 0 : index
    %c0_45 = arith.constant 0 : index
    %81 = vector.load %arg6[%c0_44, %c0_45] : memref<1x8xf32, #tpu.memory_space<vmem>>, vector<1x8xf32>
    %82 = vector.broadcast %81 : vector<1x8xf32> to vector<2x8xf32>
    %83 = arith.addf %80, %82 : vector<2x8xf32>
    %c0_46 = arith.constant 0 : index
    %c0_47 = arith.constant 0 : index
    %84 = vector.load %arg8[%c0_46, %c0_47] : memref<2x8xf32, #tpu.memory_space<vmem>>, vector<2x8xf32>
    tpu.vector_store %arg8[%c0_46, %c0_47], %83 {strides = array<i32>} : memref<2x8xf32, #tpu.memory_space<vmem>>, vector<2x8xf32>,
    return
  }
}

module attributes {stable_mosaic.version = 11 : i64} {
  func.func @_gate_kernel(%arg0: i32, %arg1: i32, %arg2: memref<1x32x256xf32, #tpu.memory_space<vmem>>, %arg3: memref<1x32x1xf32, #tpu.memory_space<vmem>>, %arg4: memref<1x32x256xf32, #tpu.memory_space<vmem>>) attributes {dimension_semantics = [#tpu.dimension_semantics<parallel>, #tpu.dimension_semantics<parallel>], iteration_bounds = array<i64: 2, 1>, scalar_prefetch = 0 : i64, scratch_operands = 0 : i64, tpu.core_type = #tpu.core_type<tc>, window_params = [{transform_indices = @transform_0, window_bounds = array<i64: 1, 32, 256>}, {transform_indices = @transform_1, window_bounds = array<i64: 1, 32, 1>}, {transform_indices = @transform_2, window_bounds = array<i64: 1, 32, 256>}]} {
    %c0 = arith.constant 0 : index
    %c0_0 = arith.constant 0 : index
    %c0_1 = arith.constant 0 : index
    %0 = vector.load %arg2[%c0, %c0_0, %c0_1] : memref<1x32x256xf32, #tpu.memory_space<vmem>>, vector<1x32x256xf32>
    %1 = vector.shape_cast %0 : vector<1x32x256xf32> to vector<32x256xf32>
    %c0_2 = arith.constant 0 : index
    %c0_3 = arith.constant 0 : index
    %c0_4 = arith.constant 0 : index
    %2 = vector.load %arg3[%c0_2, %c0_3, %c0_4] : memref<1x32x1xf32, #tpu.memory_space<vmem>>, vector<1x32x1xf32>
    %3 = vector.shape_cast %2 : vector<1x32x1xf32> to vector<32x1xf32>
    %cst = arith.constant 1.000000e+00 : f32
    %4 = vector.broadcast %cst : f32 to vector<32x1xf32>
    %5 = arith.addf %4, %3 : vector<32x1xf32>
    %6 = vector.broadcast %5 : vector<32x1xf32> to vector<32x256xf32>
    %7 = arith.mulf %1, %6 : vector<32x256xf32>
    %cst_5 = arith.constant 0.000000e+00 : f32
    %8 = vector.broadcast %cst_5 : f32 to vector<32x256xf32>
    %9 = arith.maximumf %7, %8 : vector<32x256xf32>
    %c0_6 = arith.constant 0 : index
    %c0_7 = arith.constant 0 : index
    %c0_8 = arith.constant 0 : index
    %10 = vector.load %arg4[%c0_6, %c0_7, %c0_8] : memref<1x32x256xf32, #tpu.memory_space<vmem>>, vector<1x32x256xf32>
    %11 = vector.shape_cast %10 : vector<1x32x256xf32> to vector<32x256xf32>
    %12 = vector.shape_cast %9 : vector<32x256xf32> to vector<1x32x256xf32>
    tpu.vector_store %arg4[%c0_6, %c0_7, %c0_8], %12 {strides = array<i32>} : memref<1x32x256xf32, #tpu.memory_space<vmem>>, vector<1x32x256xf32>,
    return
  }
  func.func @transform_0(%arg0: i32, %arg1: i32) -> (i32, i32, i32) {
    %c0_i32 = arith.constant 0 : i32
    %c0_i32_0 = arith.constant 0 : i32
    return %arg0, %c0_i32, %arg1 : i32, i32, i32
  }
  func.func @transform_1(%arg0: i32, %arg1: i32) -> (i32, i32, i32) {
    %c0_i32 = arith.constant 0 : i32
    %c0_i32_0 = arith.constant 0 : i32
    %c0_i32_1 = arith.constant 0 : i32
    return %arg0, %c0_i32, %c0_i32_0 : i32, i32, i32
  }
  func.func @transform_2(%arg0: i32, %arg1: i32) -> (i32, i32, i32) {
    %c0_i32 = arith.constant 0 : i32
    %c0_i32_0 = arith.constant 0 : i32
    return %arg0, %c0_i32, %arg1 : i32, i32, i32
  }
}

module attributes {stable_mosaic.version = 11 : i64} {
  func.func @_aggregate_kernel(%arg0: i32, %arg1: i32, %arg2: memref<1x32x256xf32, #tpu.memory_space<vmem>>, %arg3: memref<32x32xf32, #tpu.memory_space<vmem>>, %arg4: memref<32x1xf32, #tpu.memory_space<vmem>>, %arg5: memref<32x1xf32, #tpu.memory_space<vmem>>, %arg6: memref<32x32xf32, #tpu.memory_space<vmem>>, %arg7: memref<32x1xf32, #tpu.memory_space<vmem>>, %arg8: memref<1x32x32xf32, #tpu.memory_space<vmem>>) attributes {dimension_semantics = [#tpu.dimension_semantics<parallel>, #tpu.dimension_semantics<arbitrary>], iteration_bounds = array<i64: 2, 1>, scalar_prefetch = 0 : i64, scratch_operands = 0 : i64, tpu.core_type = #tpu.core_type<tc>, window_params = [{transform_indices = @transform_0, window_bounds = array<i64: 1, 32, 256>}, {pipeline_mode = #tpu.pipeline_mode<synchronous>, transform_indices = @transform_1, window_bounds = array<i64: 32, 32>}, {pipeline_mode = #tpu.pipeline_mode<synchronous>, transform_indices = @transform_2, window_bounds = array<i64: 32, 1>}, {pipeline_mode = #tpu.pipeline_mode<synchronous>, transform_indices = @transform_3, window_bounds = array<i64: 32, 1>}, {pipeline_mode = #tpu.pipeline_mode<synchronous>, transform_indices = @transform_4, window_bounds = array<i64: 32, 32>}, {pipeline_mode = #tpu.pipeline_mode<synchronous>, transform_indices = @transform_5, window_bounds = array<i64: 32, 1>}, {transform_indices = @transform_6, window_bounds = array<i64: 1, 32, 32>}]} {
    %c0 = arith.constant 0 : index
    %c0_0 = arith.constant 0 : index
    %0 = vector.load %arg3[%c0, %c0_0] : memref<32x32xf32, #tpu.memory_space<vmem>>, vector<32x32xf32>
    %1 = arith.truncf %0 : vector<32x32xf32> to vector<32x32xbf16>
    %c0_1 = arith.constant 0 : index
    %c0_2 = arith.constant 0 : index
    %c0_3 = arith.constant 0 : index
    %2 = vector.load %arg2[%c0_1, %c0_2, %c0_3] : memref<1x32x256xf32, #tpu.memory_space<vmem>>, vector<1x32x256xf32>
    %3 = vector.shape_cast %2 : vector<1x32x256xf32> to vector<32x256xf32>
    %4 = arith.truncf %3 : vector<32x256xf32> to vector<32x256xbf16>
    %cst = arith.constant dense<0.000000e+00> : vector<32x256xf32>
    %5 = tpu.matmul %1, %4, %cst {dimension_numbers = #tpu.dot_dimension_numbers<[1], [0], [0], [1], [0, 0, 1, 1], [], []>} : vector<32x32xbf16>, vector<32x256xbf16>, vector<32x256xf32> -> vector<32x256xf32>
    %c0_4 = arith.constant 0 : index
    %c0_5 = arith.constant 0 : index
    %6 = vector.load %arg4[%c0_4, %c0_5] : memref<32x1xf32, #tpu.memory_space<vmem>>, vector<32x1xf32>
    %7 = vector.broadcast %6 : vector<32x1xf32> to vector<32x256xf32>
    %8 = arith.mulf %5, %7 : vector<32x256xf32>
    %c0_6 = arith.constant 0 : index
    %c0_7 = arith.constant 0 : index
    %9 = vector.load %arg5[%c0_6, %c0_7] : memref<32x1xf32, #tpu.memory_space<vmem>>, vector<32x1xf32>
    %10 = vector.broadcast %9 : vector<32x1xf32> to vector<32x256xf32>
    %11 = arith.addf %8, %10 : vector<32x256xf32>
    %cst_8 = arith.constant 0.000000e+00 : f32
    %12 = vector.broadcast %cst_8 : f32 to vector<32x256xf32>
    %13 = arith.maximumf %11, %12 : vector<32x256xf32>
    %c0_9 = arith.constant 0 : index
    %c0_10 = arith.constant 0 : index
    %14 = vector.load %arg6[%c0_9, %c0_10] : memref<32x32xf32, #tpu.memory_space<vmem>>, vector<32x32xf32>
    %15 = arith.truncf %13 : vector<32x256xf32> to vector<32x256xbf16>
    %16 = arith.mulf %13, %13 : vector<32x256xf32>
    %cst_11 = arith.constant dense<0.000000e+00> : vector<256xf32>
    %17 = vector.multi_reduction <add>, %16, %cst_11 [0] : vector<32x256xf32> to vector<256xf32>
    %18 = vector.shape_cast %17 : vector<256xf32> to vector<1x256xf32>
    %19 = arith.mulf %14, %14 : vector<32x32xf32>
    %cst_12 = arith.constant dense<0.000000e+00> : vector<32xf32>
    %20 = vector.multi_reduction <add>, %19, %cst_12 [1] : vector<32x32xf32> to vector<32xf32>
    %21 = vector.shape_cast %20 : vector<32xf32> to vector<32x1xf32>
    %22 = arith.truncf %14 : vector<32x32xf32> to vector<32x32xbf16>
    %cst_13 = arith.constant dense<0.000000e+00> : vector<32x256xf32>
    %23 = tpu.matmul %22, %15, %cst_13 {dimension_numbers = #tpu.dot_dimension_numbers<[1], [0], [0], [1], [0, 0, 1, 1], [], []>} : vector<32x32xbf16>, vector<32x256xbf16>, vector<32x256xf32> -> vector<32x256xf32>
    %c0_14 = arith.constant 0 : index
    %c0_15 = arith.constant 0 : index
    %24 = vector.load %arg7[%c0_14, %c0_15] : memref<32x1xf32, #tpu.memory_space<vmem>>, vector<32x1xf32>
    %cst_16 = arith.constant 2.000000e+00 : f32
    %25 = vector.broadcast %cst_16 : f32 to vector<32x256xf32>
    %26 = arith.mulf %25, %23 : vector<32x256xf32>
    %27 = vector.broadcast %18 : vector<1x256xf32> to vector<32x256xf32>
    %28 = arith.subf %27, %26 : vector<32x256xf32>
    %29 = vector.broadcast %21 : vector<32x1xf32> to vector<32x256xf32>
    %30 = arith.addf %28, %29 : vector<32x256xf32>
    %31 = vector.broadcast %24 : vector<32x1xf32> to vector<32x256xf32>
    %32 = arith.mulf %31, %30 : vector<32x256xf32>
    %cst_17 = arith.constant dense<0xFF800000> : vector<256xf32>
    %33 = vector.multi_reduction <maximumf>, %32, %cst_17 [0] : vector<32x256xf32> to vector<256xf32>
    %34 = vector.shape_cast %33 : vector<256xf32> to vector<1x256xf32>
    %35 = vector.broadcast %34 : vector<1x256xf32> to vector<32x256xf32>
    %36 = arith.subf %32, %35 : vector<32x256xf32>
    %37 = math.exp %36 : vector<32x256xf32>
    %cst_18 = arith.constant dense<0.000000e+00> : vector<256xf32>
    %38 = vector.multi_reduction <add>, %37, %cst_18 [0] : vector<32x256xf32> to vector<256xf32>
    %39 = vector.shape_cast %38 : vector<256xf32> to vector<1x256xf32>
    %40 = tpu.reciprocal %39 {approx = true} : vector<1x256xf32> -> vector<1x256xf32>
    %41 = vector.broadcast %40 : vector<1x256xf32> to vector<32x256xf32>
    %42 = arith.mulf %37, %41 : vector<32x256xf32>
    %43 = arith.truncf %42 : vector<32x256xf32> to vector<32x256xbf16>
    %cst_19 = arith.constant dense<0.000000e+00> : vector<32x32xf32>
    %44 = tpu.matmul %43, %15, %cst_19 {dimension_numbers = #tpu.dot_dimension_numbers<[1], [1], [0], [0], [0, 0, 1, 0], [], []>} : vector<32x256xbf16>, vector<32x256xbf16>, vector<32x32xf32> -> vector<32x32xf32>
    %cst_20 = arith.constant dense<0.000000e+00> : vector<32xf32>
    %45 = vector.multi_reduction <add>, %42, %cst_20 [1] : vector<32x256xf32> to vector<32xf32>
    %46 = vector.shape_cast %45 : vector<32xf32> to vector<32x1xf32>
    %c0_i32 = arith.constant 0 : i32
    %47 = arith.cmpi eq, %arg1, %c0_i32 : i32
    %48 = arith.extui %47 : i1 to i32
    %c0_i32_21 = arith.constant 0 : i32
    %49 = arith.cmpi ne, %48, %c0_i32_21 : i32
    scf.if %49 {
      %cst_28 = arith.constant 0.000000e+00 : f32
      %59 = vector.broadcast %cst_28 : f32 to vector<32x32xf32>
      %c0_29 = arith.constant 0 : index
      %c0_30 = arith.constant 0 : index
      %c0_31 = arith.constant 0 : index
      %60 = vector.load %arg8[%c0_29, %c0_30, %c0_31] : memref<1x32x32xf32, #tpu.memory_space<vmem>>, vector<1x32x32xf32>
      %61 = vector.shape_cast %60 : vector<1x32x32xf32> to vector<32x32xf32>
      %62 = vector.shape_cast %59 : vector<32x32xf32> to vector<1x32x32xf32>
      tpu.vector_store %arg8[%c0_29, %c0_30, %c0_31], %62 {strides = array<i32>} : memref<1x32x32xf32, #tpu.memory_space<vmem>>, vector<1x32x32xf32>,
    } else {
    }
    %c0_22 = arith.constant 0 : index
    %c0_23 = arith.constant 0 : index
    %c0_24 = arith.constant 0 : index
    %50 = vector.load %arg8[%c0_22, %c0_23, %c0_24] : memref<1x32x32xf32, #tpu.memory_space<vmem>>, vector<1x32x32xf32>
    %51 = vector.shape_cast %50 : vector<1x32x32xf32> to vector<32x32xf32>
    %52 = vector.broadcast %46 : vector<32x1xf32> to vector<32x32xf32>
    %53 = arith.mulf %52, %14 : vector<32x32xf32>
    %54 = arith.subf %44, %53 : vector<32x32xf32>
    %55 = arith.addf %51, %54 : vector<32x32xf32>
    %c0_25 = arith.constant 0 : index
    %c0_26 = arith.constant 0 : index
    %c0_27 = arith.constant 0 : index
    %56 = vector.load %arg8[%c0_25, %c0_26, %c0_27] : memref<1x32x32xf32, #tpu.memory_space<vmem>>, vector<1x32x32xf32>
    %57 = vector.shape_cast %56 : vector<1x32x32xf32> to vector<32x32xf32>
    %58 = vector.shape_cast %55 : vector<32x32xf32> to vector<1x32x32xf32>
    tpu.vector_store %arg8[%c0_25, %c0_26, %c0_27], %58 {strides = array<i32>} : memref<1x32x32xf32, #tpu.memory_space<vmem>>, vector<1x32x32xf32>,
    return
  }
  func.func @transform_0(%arg0: i32, %arg1: i32) -> (i32, i32, i32) {
    %c0_i32 = arith.constant 0 : i32
    %c0_i32_0 = arith.constant 0 : i32
    return %arg0, %c0_i32, %arg1 : i32, i32, i32
  }
  func.func @transform_1(%arg0: i32, %arg1: i32) -> (i32, i32) {
    %c0_i32 = arith.constant 0 : i32
    %c0_i32_0 = arith.constant 0 : i32
    %c0_i32_1 = arith.constant 0 : i32
    return %c0_i32, %c0_i32_0 : i32, i32
  }
  func.func @transform_2(%arg0: i32, %arg1: i32) -> (i32, i32) {
    %c0_i32 = arith.constant 0 : i32
    %c0_i32_0 = arith.constant 0 : i32
    %c0_i32_1 = arith.constant 0 : i32
    return %c0_i32, %c0_i32_0 : i32, i32
  }
  func.func @transform_3(%arg0: i32, %arg1: i32) -> (i32, i32) {
    %c0_i32 = arith.constant 0 : i32
    %c0_i32_0 = arith.constant 0 : i32
    %c0_i32_1 = arith.constant 0 : i32
    return %c0_i32, %c0_i32_0 : i32, i32
  }
  func.func @transform_4(%arg0: i32, %arg1: i32) -> (i32, i32) {
    %c0_i32 = arith.constant 0 : i32
    %c0_i32_0 = arith.constant 0 : i32
    %c0_i32_1 = arith.constant 0 : i32
    return %c0_i32, %c0_i32_0 : i32, i32
  }
  func.func @transform_5(%arg0: i32, %arg1: i32) -> (i32, i32) {
    %c0_i32 = arith.constant 0 : i32
    %c0_i32_0 = arith.constant 0 : i32
    %c0_i32_1 = arith.constant 0 : i32
    return %c0_i32, %c0_i32_0 : i32, i32
  }
  func.func @transform_6(%arg0: i32, %arg1: i32) -> (i32, i32, i32) {
    %c0_i32 = arith.constant 0 : i32
    %c0_i32_0 = arith.constant 0 : i32
    %c0_i32_1 = arith.constant 0 : i32
    return %arg0, %c0_i32, %c0_i32_0 : i32, i32, i32
  }
}

</mosaic_0001>

<bundles_post_ra>
// kernel: enc_module_forward.4
= control target key start
LH: loop header
LB: loop body
LE: loop exit
PB: predicated region body
PF: predicated region fallthrough
CT: control target
= control target key end

     0   :  { %s557_s12 = smov 0   ;;  %s559_s13 = smov 0   ;;  %s653_s0 = inlined_call_operand.vmem [shape: f32[2,32,256], index: 0, kind: input, shape index: {}]   ;;  %s654_s1 = inlined_call_operand.vmem [shape: f32[32,32], index: 1, kind: input, shape index: {}]   ;;  %s655_s2 = inlined_call_operand.vmem [shape: f32[2,32,1], index: 2, kind: output, shape index: {0}]   ;;  %s656_s3 = inlined_call_operand.vmem [shape: f32[2,32,1], index: 3, kind: output, shape index: {1}]  }
   0x1   :  { %s561_s14 = smov 0  }
   0x2 LB: > { %s26_s15 = sadd.s32 1, %s529_s13  ;;  %p467_p0 = scmp.ge.s32.totalorder %s533_s14, 1  ;;  %s533_s14 = sphi %s561_s14, %s14_s14   ;;  %s529_s13 = sphi %s559_s13, %s658_s13   ;;  %s525_s12 = sphi %s557_s12, %s657_s12  }
   0x3   : > { %p28_p1 = scmp.ge.s32.totalorder %s26_s15, 2  ;;  %p159_p2 = scmp.lt.s32.totalorder %s533_s14, 3 }
   0x5   : > { %s660_s15 = smov (%p28_p1, %s26_s15), 0  ;;  %p160_p3 = pnand %p467_p0, %p159_p2 }
   0x6   : > { %p193_p4 = scmp.lt.s32.totalorder (!%p160_p3), %s525_s12, 1  ;;  %v535_v0 = vmov (!%p160_p3), 0   ;;  %v213_v12 = vld [vmem:[%s654_s1] sm:$0xff] (!%p160_p3)  ;;  %v214_v14 = vld [vmem:[%s654_s1 + $0x8] sm:$0xff] (!%p160_p3)  ;;  %v215_v15 = vld [vmem:[%s654_s1 + $0x10] sm:$0xff] (!%p160_p3)  ;;  %vm231_vm0 = vcmask (!%p160_p3), 261120  }
   0x7   : > { %163 = sbr.rel (%p160_p3) target bundleno = 401 (0x191), region = 28  ;;  %270 = vmatprep.mubr.bf16.mxu0 (!%p160_p3), %v535_v0  ;;  %280 = vmatprep.mubr.bf16.mxu1 (!%p160_p3), %v535_v0  ;;  %v216_v16 = vld [vmem:[%s654_s1 + $0x18] sm:$0xff] (!%p160_p3)  ;;  %v217_v17 = vpack.c.bf16 (!%p160_p3), %v214_v14, %v213_v12  ;;  %vm295_vm1 = vcmask (!%p160_p3), 7168   ;;  %v536_v19 = vmov (!%p160_p3), 0.0  }
   0x8   : > { %v218_v18 = vpack.c.bf16 (!%p160_p3), %v216_v16, %v215_v15 }
   0xe   : > { %s662_s12 = smov (!%p193_p4, %s525_s12), 1 }
   0xf   : > { %s478_s16 = sshll.u32 %s662_s12, 6  ;;  %s479_s28 = sshll.u32 %s662_s12, 5 }
  0x10   : > { %s200_s19 = scalar_lea.vmem %s653_s0, %s478_s16  ;;  %s597_s4 = scalar_lea.vmem %s655_s2, %s479_s28 }
  0x11   : > { %v220_v1 = vld [vmem:[%s200_s19 + $0x8] sm:$0xff]  ;;  %v222_v2 = vld [vmem:[%s200_s19 + $0x18] sm:$0xff]  ;;  %v219_v3 = vld [vmem:[%s200_s19] sm:$0xff]  ;;  %s602_s7 = scalar_lea.vmem %s656_s3, %s479_s28  ;;  %298 = vst.msk [vmem:[%s597_s4 + $0x10] sm:$0xff] %vm295_vm1, %v536_v19 }
  0x12   : > { %v228_v4 = vpack.c.bf16 %v222_v2, %v220_v1  ;;  %v221_v5 = vld [vmem:[%s200_s19 + $0x10] sm:$0xff]  ;;  %v224_v6 = vld [vmem:[%s200_s19 + $0x28] sm:$0xff]  ;;  %v226_v7 = vld [vmem:[%s200_s19 + $0x38] sm:$0xff]  ;;  %296 = vst.msk [vmem:[%s597_s4] sm:$0xff] %vm295_vm1, %v536_v19 }
  0x13   : > { %v227_v8 = vpack.c.bf16 %v221_v5, %v219_v3  ;;  %v230_v9 = vpack.c.bf16 %v226_v7, %v224_v6  ;;  %v223_v10 = vld [vmem:[%s200_s19 + $0x20] sm:$0xff]  ;;  %v225_v11 = vld [vmem:[%s200_s19 + $0x30] sm:$0xff]  ;;  %297 = vst.msk [vmem:[%s597_s4 + $0x8] sm:$0xff] %vm295_vm1, %v536_v19  ;;  %299 = vst.msk [vmem:[%s597_s4 + $0x18] sm:$0xff] %vm295_vm1, %v536_v19 }
  0x14   : > { %238 = vmatprep.subr.bf16.mxu0 %v228_v4  ;;  %481 = vmatprep.subr.bf16.mxu1 %v228_v4  ;;  %v229_v13 = vpack.c.bf16 %v225_v11, %v223_v10  ;;  %300 = vst.msk [vmem:[%s602_s7] sm:$0xff] %vm295_vm1, %v536_v19  ;;  %301 = vst.msk [vmem:[%s602_s7 + $0x8] sm:$0xff] %vm295_vm1, %v536_v19 }
  0x15   : > { %239 = vmatpush1.bf16.msra.mxu0 %v227_v8  ;;  %483 = vmatpush1.bf16.msra.mxu1 %v227_v8  ;;  %302 = vst.msk [vmem:[%s602_s7 + $0x10] sm:$0xff] %vm295_vm1, %v536_v19  ;;  %303 = vst.msk [vmem:[%s602_s7 + $0x18] sm:$0xff] %vm295_vm1, %v536_v19 }
  0x16   : > { %240 = vmatprep.subr.bf16.mxu0 %v230_v9  ;;  %482 = vmatprep.subr.bf16.mxu1 %v230_v9 }
  0x18   : > { %v306_v44 = vld [vmem:[%s597_s4 + $0x10] sm:$0xff] }
  0x19   : > { %241 = vmatpush1.bf16.msra.mxu0 %v229_v13  ;;  %484 = vmatpush1.bf16.msra.mxu1 %v229_v13  ;;  %v304_v45 = vld [vmem:[%s597_s4] sm:$0xff] }
  0x1a   : > { %v307_v50 = vld [vmem:[%s597_s4 + $0x18] sm:$0xff]  ;;  %v305_v51 = vld [vmem:[%s597_s4 + $0x8] sm:$0xff] }
  0x1b   : > { %v330_v56 = vld [vmem:[%s602_s7 + $0x8] sm:$0xff]  ;;  %v329_v57 = vld [vmem:[%s602_s7] sm:$0xff] }
  0x1c   : > { %474 = vmatmul.mubr.msk.bf16.vlgmr.msra.gmra.mrb[0].mxu0 %vm231_vm0, %v217_v17  ;;  %475 = vmatmul.mubr.msk.bf16.vlgmr.msra.gmra.mrb[0].mxu1 %vm231_vm0, %v218_v18  ;;  %v332_v62 = vld [vmem:[%s602_s7 + $0x18] sm:$0xff]  ;;  %v331_v63 = vld [vmem:[%s602_s7 + $0x10] sm:$0xff] }
  0xef   : > { %v272_v20 = vpop.f32.mrb[0].mxu0  ;;  %v282_v21 = vpop.f32.mrb[0].mxu1 }
  0xf0   : > { %v333_v22 = vmul.f32 %v272_v20, %v272_v20  ;;  %v337_v23 = vmul.f32 %v282_v21, %v282_v21  ;;  %v274_v24 = vpop.f32.mrb[1].mxu0  ;;  %v284_v25 = vpop.f32.mrb[1].mxu1 }
  0xf1   : > { %v334_v26 = vmul.f32 %v274_v24, %v274_v24  ;;  %v338_v27 = vmul.f32 %v284_v25, %v284_v25  ;;  %v276_v28 = vpop.f32.mrb[2].mxu0  ;;  %v286_v29 = vpop.f32.mrb[2].mxu1  ;;  %v314_v30 = vadd.f32 %v284_v25, %v282_v21  ;;  %v308_v31 = vadd.f32 %v274_v24, %v272_v20 }
  0xf2   : > { %v335_v32 = vmul.f32 %v276_v28, %v276_v28  ;;  %v339_v33 = vmul.f32 %v286_v29, %v286_v29  ;;  %v278_v34 = vpop.f32.mrb[3].mxu0  ;;  %v288_v35 = vpop.f32.mrb[3].mxu1 }
  0xf3   : > { %v311_v36 = vadd.f32 %v278_v34, %v276_v28  ;;  %v336_v37 = vmul.f32 %v278_v34, %v278_v34  ;;  %v317_v38 = vadd.f32 %v288_v35, %v286_v29  ;;  %v340_v39 = vmul.f32 %v288_v35, %v288_v35  ;;  %315 = vadd.xlane.f32.xlu1 %v314_v30 }
  0xf4   : > { %309 = vadd.xlane.f32.xlu0 %v308_v31  ;;  %v341_v40 = vadd.f32 %v334_v26, %v333_v22  ;;  %v347_v41 = vadd.f32 %v338_v27, %v337_v23 }
  0xf5   : > { %v344_v42 = vadd.f32 %v336_v37, %v335_v32  ;;  %v350_v43 = vadd.f32 %v340_v39, %v339_v33 }
  0xf7   : > { %318 = vadd.xlane.f32.xlu1 %v317_v38 }
  0xf8   : > { %312 = vadd.xlane.f32.xlu0 %v311_v36 }
  0xfb   : > { %345 = vadd.xlane.f32.xlu1 %v344_v42 }
  0xfc   : > { %342 = vadd.xlane.f32.xlu0 %v341_v40 }
  0xff   : > { %351 = vadd.xlane.f32.xlu1 %v350_v43 }
 0x100   : > { %348 = vadd.xlane.f32.xlu0 %v347_v41 }
 0x180   : > { %v316_v46 = vpop.xlane.xlu1 %315 }
 0x181   : > { %v322_v47 = vadd.f32 %v316_v46, %v306_v44  ;;  %v310_v48 = vpop.xlane.xlu0 %309 }
 0x182   : > { %v320_v49 = vadd.f32 %v310_v48, %v304_v45 }
 0x183   : > { %327 = vst.msk [vmem:[%s597_s4 + $0x10] sm:$0xff] %vm295_vm1, %v322_v47 }
 0x184   : > { %325 = vst.msk [vmem:[%s597_s4] sm:$0xff] %vm295_vm1, %v320_v49  ;;  %v319_v52 = vpop.xlane.xlu1 %318 }
 0x185   : > { %v323_v53 = vadd.f32 %v319_v52, %v307_v50  ;;  %v313_v54 = vpop.xlane.xlu0 %312 }
 0x186   : > { %v321_v55 = vadd.f32 %v313_v54, %v305_v51 }
 0x187   : > { %328 = vst.msk [vmem:[%s597_s4 + $0x18] sm:$0xff] %vm295_vm1, %v323_v53 }
 0x188   : > { %326 = vst.msk [vmem:[%s597_s4 + $0x8] sm:$0xff] %vm295_vm1, %v321_v55  ;;  %v346_v58 = vpop.xlane.xlu1 %345 }
 0x189   : > { %v354_v59 = vadd.f32 %v346_v58, %v330_v56  ;;  %v343_v60 = vpop.xlane.xlu0 %342 }
 0x18a   : > { %v353_v61 = vadd.f32 %v343_v60, %v329_v57 }
 0x18b   : > { %358 = vst.msk [vmem:[%s602_s7 + $0x8] sm:$0xff] %vm295_vm1, %v354_v59 }
 0x18c   : > { %357 = vst.msk [vmem:[%s602_s7] sm:$0xff] %vm295_vm1, %v353_v61  ;;  %v352_v0 = vpop.xlane.xlu1 %351 }
 0x18d   : > { %v356_v1 = vadd.f32 %v352_v0, %v332_v62  ;;  %v349_v2 = vpop.xlane.xlu0 %348 }
 0x18e   : > { %v355_v3 = vadd.f32 %v349_v2, %v331_v63 }
 0x18f   : > { %360 = vst.msk [vmem:[%s602_s7 + $0x18] sm:$0xff] %vm295_vm1, %v356_v1 }
 0x190   : > { %359 = vst.msk [vmem:[%s602_s7 + $0x10] sm:$0xff] %vm295_vm1, %v355_v3 }
 0x191 PF: > { %s14_s14 = sadd.s32 1, %s533_s14   ;;  %s657_s12 = smov %s529_s13 }
 0x192   : > { %p11_p5 = scmp.ge.s32.totalorder %s14_s14, 4   ;;  %s658_s13 = smov %s660_s15 }
 0x194   :  { %13 = sbr.rel (!%p11_p5) target bundleno = 2 (0x2), region = 74 }

// kernel: enc_module_forward.7
= control target key start
LH: loop header
LB: loop body
LE: loop exit
PB: predicated region body
PF: predicated region fallthrough
CT: control target
= control target key end

     0   :  { %s445_s9 = smov 0   ;;  %s447_s10 = smov 0   ;;  %s485_s0 = inlined_call_operand.vmem [shape: f32[2,32,256], index: 0, kind: input, shape index: {}]   ;;  %s486_s1 = inlined_call_operand.vmem [shape: f32[2,32,1], index: 1, kind: input, shape index: {}]   ;;  %s487_s2 = inlined_call_operand.vmem [shape: f32[2,32,256], index: 2, kind: output, shape index: {}]  }
   0x1   :  { %s449_s11 = smov 0  }
   0x2 LB: > { %s24_s12 = sadd.s32 1, %s423_s10  ;;  %p366_p0 = scmp.ge.s32.totalorder %s427_s11, 1  ;;  %s427_s11 = sphi %s449_s11, %s12_s11   ;;  %s423_s10 = sphi %s447_s10, %s489_s10   ;;  %s419_s9 = sphi %s445_s9, %s488_s9  }
   0x3   : > { %p26_p1 = scmp.ge.s32.totalorder %s24_s12, 2  ;;  %p143_p2 = scmp.lt.s32.totalorder %s427_s11, 3 }
   0x5   : > { %s491_s12 = smov (%p26_p1, %s24_s12), 0  ;;  %p144_p3 = pnand %p366_p0, %p143_p2 }
   0x6   : > { %p179_p4 = scmp.lt.s32.totalorder (!%p144_p3), %s419_s9, 1  ;;  %v429_v0 = vmov (!%p144_p3), 0  }
   0x7   : > { %147 = sbr.rel (%p144_p3) target bundleno = 158 (0x9e), region = 28  ;;  %404 = vset.pattern.permute.xlu1 (!%p144_p3), %v429_v0  ;;  %403 = vset.pattern.permute.xlu0 (!%p144_p3), %v429_v0 }
   0xe   : > { %s493_s9 = smov (!%p179_p4, %s419_s9), 1 }
   0xf   : > { %s376_s13 = sshll.u32 %s493_s9, 5  ;;  %s375_s17 = sshll.u32 %s493_s9, 6 }
  0x10   : > { %s192_s16 = scalar_lea.vmem %s486_s1, %s376_s13  ;;  %s186_s20 = scalar_lea.vmem %s485_s0, %s375_s17 }
  0x11   : > { %v213_v1 = vld [vmem:[%s192_s16 + $0x10] sm:$0xff]  ;;  %v211_v2 = vld [vmem:[%s192_s16] sm:$0xff]  ;;  %v214_v3 = vld [vmem:[%s192_s16 + $0x18] sm:$0xff]  ;;  %s201_s23 = scalar_lea.vmem %s487_s2, %s375_s17 }
  0x12   : > { %v217_v4 = vadd.f32 1.0, %v213_v1  ;;  %v215_v5 = vadd.f32 1.0, %v211_v2  ;;  %v212_v6 = vld [vmem:[%s192_s16 + $0x8] sm:$0xff]  ;;  %v218_v7 = vadd.f32 1.0, %v214_v3  ;;  %v207_v9 = vld [vmem:[%s186_s20 + $0x20] sm:$0xff]  ;;  %v209_v19 = vld [vmem:[%s186_s20 + $0x30] sm:$0xff] }
  0x13   : > { %v216_v8 = vadd.f32 1.0, %v212_v6  ;;  %v208_v10 = vld [vmem:[%s186_s20 + $0x28] sm:$0xff]  ;;  %v203_v11 = vld [vmem:[%s186_s20] sm:$0xff]  ;;  %v210_v20 = vld [vmem:[%s186_s20 + $0x38] sm:$0xff] }
  0x14   : > { %231 = vperm.xlu1 %404, %v217_v4   ;;  %221 = vperm.xlu0 %403, %v215_v5   ;;  %v204_v12 = vld [vmem:[%s186_s20 + $0x8] sm:$0xff]  ;;  %v205_v21 = vld [vmem:[%s186_s20 + $0x10] sm:$0xff]  ;;  %v206_v22 = vld [vmem:[%s186_s20 + $0x18] sm:$0xff] }
  0x18   : > { %236 = vperm.xlu1 %404, %v218_v7   ;;  %226 = vperm.xlu0 %403, %v216_v8  }
  0x93   : > { %v232_v13 = vpop.permute.xlu1 %231  ;;  %v222_v14 = vpop.permute.xlu0 %221 }
  0x94   : > { %v243_v15 = vmul.f32 %v232_v13, %v207_v9  ;;  %v244_v16 = vmul.f32 %v232_v13, %v208_v10  ;;  %v239_v17 = vmul.f32 %v222_v14, %v203_v11  ;;  %v240_v18 = vmul.f32 %v222_v14, %v204_v12 }
  0x96   : > { %v251_v23 = vmax.f32 %v243_v15, 0.0  ;;  %v252_v24 = vmax.f32 %v244_v16, 0.0  ;;  %v247_v25 = vmax.f32 %v239_v17, 0.0  ;;  %v248_v26 = vmax.f32 %v240_v18, 0.0 }
  0x97   : > { %v237_v27 = vpop.permute.xlu1 %236  ;;  %v227_v28 = vpop.permute.xlu0 %226 }
  0x98   : > { %259 = vst [vmem:[%s201_s23 + $0x20] sm:$0xff] %v251_v23  ;;  %260 = vst [vmem:[%s201_s23 + $0x28] sm:$0xff] %v252_v24  ;;  %v245_v29 = vmul.f32 %v237_v27, %v209_v19  ;;  %v246_v30 = vmul.f32 %v237_v27, %v210_v20  ;;  %v241_v31 = vmul.f32 %v227_v28, %v205_v21 }
  0x99   : > { %255 = vst [vmem:[%s201_s23] sm:$0xff] %v247_v25  ;;  %256 = vst [vmem:[%s201_s23 + $0x8] sm:$0xff] %v248_v26  ;;  %v242_v32 = vmul.f32 %v227_v28, %v206_v22 }
  0x9a   : > { %v253_v33 = vmax.f32 %v245_v29, 0.0  ;;  %v254_v34 = vmax.f32 %v246_v30, 0.0  ;;  %v249_v35 = vmax.f32 %v241_v31, 0.0 }
  0x9b   : > { %v250_v36 = vmax.f32 %v242_v32, 0.0 }
  0x9c   : > { %261 = vst [vmem:[%s201_s23 + $0x30] sm:$0xff] %v253_v33  ;;  %262 = vst [vmem:[%s201_s23 + $0x38] sm:$0xff] %v254_v34 }
  0x9d   : > { %257 = vst [vmem:[%s201_s23 + $0x10] sm:$0xff] %v249_v35  ;;  %258 = vst [vmem:[%s201_s23 + $0x18] sm:$0xff] %v250_v36 }
  0x9e PF: > { %s12_s11 = sadd.s32 1, %s427_s11   ;;  %s488_s9 = smov %s423_s10 }
  0x9f   : > { %p9_p5 = scmp.ge.s32.totalorder %s12_s11, 4   ;;  %s489_s10 = smov %s491_s12 }
  0xa1   :  { %11 = sbr.rel (!%p9_p5) target bundleno = 2 (0x2), region = 61 }

// kernel: enc_module_forward.6
= control target key start
LH: loop header
LB: loop body
LE: loop exit
PB: predicated region body
PF: predicated region fallthrough
CT: control target
= control target key end

     0   :  { %vm33_vm0 = vcmask 261120   ;;  %s745_s0 = inlined_call_operand.vmem [shape: f32[2,32,32], index: 0, kind: input, shape index: {}]   ;;  %s746_s1 = inlined_call_operand.vmem [shape: f32[32,1], index: 1, kind: input, shape index: {}]   ;;  %s747_s2 = inlined_call_operand.vmem [shape: f32[32,1], index: 2, kind: input, shape index: {}]   ;;  %s748_s3 = inlined_call_operand.vmem [shape: f32[32,32], index: 3, kind: input, shape index: {}]   ;;  %s749_s4 = inlined_call_operand.vmem [shape: f32[1,32], index: 4, kind: input, shape index: {}]   ;;  %s750_s5 = inlined_call_operand.vmem [shape: f32[8,32], index: 5, kind: input, shape index: {}]   ;;  %s751_s6 = inlined_call_operand.vmem [shape: f32[1,8], index: 6, kind: input, shape index: {}]   ;;  %s752_s7 = inlined_call_operand.vmem [shape: f32[2,32], index: 7, kind: output, shape index: {0}]   ;;  %s753_s8 = inlined_call_operand.hbm [shape: f32[2,8], index: 8, kind: output, shape index: {1}]  }
   0x1   :  { %v450_v0 = vld [vmem:[%s745_s0 + $0x20] sm:$0xff]  ;;  %v451_v2 = vld [vmem:[%s745_s0 + $0x28] sm:$0xff] }
   0x2   :  { %v29_v1 = vld [vmem:[%s745_s0] sm:$0xff]  ;;  %v55_v3 = vsel %vm33_vm0, %v450_v0, 0.0  ;;  %v30_v5 = vld [vmem:[%s745_s0 + $0x8] sm:$0xff]  ;;  %v58_v6 = vsel %vm33_vm0, %v451_v2, 0.0 }
   0x3   :  { %v34_v4 = vsel %vm33_vm0, %v29_v1, 0.0  ;;  %56 = vadd.xlane.f32.xlu1 %v55_v3  ;;  %v37_v7 = vsel %vm33_vm0, %v30_v5, 0.0 }
   0x4   :  { %35 = vadd.xlane.f32.xlu0 %v34_v4 }
   0x5   :  { %14 = vsyncpa [#allocation3], 0  ;;  %v452_v8 = vld [vmem:[%s745_s0 + $0x30] sm:$0xff]  ;;  %v615_v12 = vld [vmem:[%s745_s0 + $0x38] sm:$0xff]  ;;  %v538_v16 = vmov 0   ;;  %v539_v4 = vmov 0.0|0.0  }
   0x6   :  { %v31_v9 = vld [vmem:[%s745_s0 + $0x10] sm:$0xff]  ;;  %v61_v10 = vsel %vm33_vm0, %v452_v8, 0.0  ;;  %v32_v13 = vld [vmem:[%s745_s0 + $0x18] sm:$0xff]  ;;  %v64_v14 = vsel %vm33_vm0, %v615_v12, 0.0  ;;  %501 = vset.pattern.permute.xlu1 %v538_v16  ;;  %500 = vset.pattern.permute.xlu0 %v538_v16  ;;  %v137_v54 = vld [vmem:[%s746_s1 + $0x8] sm:$0xff]  ;;  %vm541_vm2 = vmmov 0  }
   0x7   :  { %59 = vadd.xlane.f32.xlu1 %v58_v6  ;;  %v40_v11 = vsel %vm33_vm0, %v31_v9, 0.0  ;;  %v43_v15 = vsel %vm33_vm0, %v32_v13, 0.0  ;;  %v138_v55 = vld [vmem:[%s746_s1 + $0x10] sm:$0xff]  ;;  %v136_v56 = vld [vmem:[%s746_s1] sm:$0xff]  ;;  %v141_v58 = vld [vmem:[%s747_s2 + $0x8] sm:$0xff]  ;;  %487 = vmatprep.subr.bf16.mxu0 %v539_v4  ;;  %vm242_vm3 = vcmask 1040384  }
   0x8   :  { %38 = vadd.xlane.f32.xlu0 %v37_v7  ;;  %v140_v57 = vld [vmem:[%s747_s2] sm:$0xff]  ;;  %v139_v59 = vld [vmem:[%s746_s1 + $0x18] sm:$0xff]  ;;  %v142_v60 = vld [vmem:[%s747_s2 + $0x10] sm:$0xff]  ;;  %s542_s23 = smov [#allocation2]   ;;  %vm430_vm4 = vcmask 58368  }
   0x9   :  { %vm489_vm1 = vmpackc.low %vm33_vm0, %vm33_vm0  ;;  %v248_v6 = vld [vmem:[%s748_s3 + $0x18] sm:$0xff]  ;;  %s440_s24 = sshll.u32 %s542_s23, 4  ;;  %s441_s24 = int_to_ptr.vmem [resolvable:$true] %s440_s24 }
   0xa   :  { %s514_s25 = scalar_lea.vmem %s441_s24, 32  ;;  %p519_p1 = scmp.lt.s32.totalorder %s441_s24, %s441_s24 }
   0xb   :  { %62 = vadd.xlane.f32.xlu1 %v61_v10  ;;  %p515_p0 = scmp.ne.s32.totalorder %s441_s24, %s514_s25  ;;  %p520_p2 = scmp.lt.s32.totalorder %s514_s25, %s514_s25 }
   0xc   :  { %41 = vadd.xlane.f32.xlu0 %v40_v11 }
   0xd   :  { %p521_p3 = por %p520_p2, %p519_p1 }
   0xf   :  { %65 = vadd.xlane.f32.xlu1 %v64_v14  ;;  %p522_p4 = pnand %p521_p3, %p515_p0 }
  0x10   :  { %44 = vadd.xlane.f32.xlu0 %v43_v15 }
  0x90   :  { %v57_v17 = vpop.xlane.xlu1 %56 }
  0x91   :  { %v36_v18 = vpop.xlane.xlu0 %35 }
  0x92   :  { %v67_v19 = vadd.f32 %v57_v17, %v36_v18 }
  0x94   :  { %v72_v20 = vmul.f32 0.015625, %v67_v19  ;;  %v60_v21 = vpop.xlane.xlu1 %59 }
  0x95   :  { %v39_v22 = vpop.xlane.xlu0 %38 }
  0x96   :  { %v623_v23 = vsub.f32 %v29_v1, %v72_v20  ;;  %v625_v24 = vsub.f32 %v450_v0, %v72_v20  ;;  %v68_v25 = vadd.f32 %v60_v21, %v39_v22  ;;  %v143_v0 = vld [vmem:[%s747_s2 + $0x18] sm:$0xff]  ;;  %v245_v1 = vld [vmem:[%s748_s3] sm:$0xff] }
  0x98   :  { %v73_v26 = vmul.f32 0.015625, %v68_v25  ;;  %v80_v27 = vmul.f32 %v623_v23, %v623_v23  ;;  %v63_v28 = vpop.xlane.xlu1 %62  ;;  %v104_v30 = vmul.f32 %v625_v24, %v625_v24 }
  0x99   :  { %v42_v29 = vpop.xlane.xlu0 %41 }
  0x9a   :  { %v631_v31 = vsub.f32 %v30_v5, %v73_v26  ;;  %v633_v32 = vsub.f32 %v451_v2, %v73_v26  ;;  %v84_v33 = vsel %vm33_vm0, %v80_v27, 0.0  ;;  %v69_v34 = vadd.f32 %v63_v28, %v42_v29  ;;  %v246_v2 = vld [vmem:[%s748_s3 + $0x8] sm:$0xff]  ;;  %v247_v5 = vld [vmem:[%s748_s3 + $0x10] sm:$0xff] }
  0x9b   :  { %85 = vadd.xlane.f32.xlu0 %v84_v33  ;;  %v108_v37 = vsel %vm33_vm0, %v104_v30, 0.0  ;;  %v488_v3 = vpack.c.bf16 %v246_v2, %v245_v1  ;;  %v492_v7 = vpack.c.bf16 %v248_v6, %v247_v5 }
  0x9c   :  { %v74_v35 = vmul.f32 0.015625, %v69_v34  ;;  %v81_v36 = vmul.f32 %v631_v31, %v631_v31  ;;  %v66_v38 = vpop.xlane.xlu1 %65  ;;  %v105_v40 = vmul.f32 %v633_v32, %v633_v32 }
  0x9d   :  { %v45_v39 = vpop.xlane.xlu0 %44  ;;  %490 = vmatpush3.bf16.xpose.msk.msra.mxu0 %vm489_vm1, %v488_v3 }
  0x9e   :  { %v641_v41 = vsub.f32 %v31_v9, %v74_v35  ;;  %v643_v42 = vsub.f32 %v452_v8, %v74_v35  ;;  %v87_v43 = vsel %vm33_vm0, %v81_v36, 0.0  ;;  %v70_v44 = vadd.f32 %v66_v38, %v45_v39  ;;  %491 = vmatprep.subr.bf16.mxu0 %v539_v4  ;;  %v349_v8 = vld [vmem:[%s750_s5] sm:$0xff] }
  0x9f   :  { %109 = vadd.xlane.f32.xlu0 %v108_v37  ;;  %88 = vadd.xlane.f32.xlu1 %v87_v43  ;;  %v111_v49 = vsel %vm33_vm0, %v105_v40, 0.0  ;;  %v540_v9 = vmov 0.0  }
  0xa0   :  { %v75_v45 = vmul.f32 0.015625, %v70_v44  ;;  %v82_v46 = vmul.f32 %v641_v41, %v641_v41  ;;  %v106_v47 = vmul.f32 %v643_v42, %v643_v42  ;;  %482 = vmatprep.subr.mxu1 %v540_v9  ;;  %479 = vmatprep.mubr.msk.f32.mxu0 %vm541_vm2, %v540_v9 }
  0xa1   :  { %483 = vmatpush3.xpose.msk.msra.mxu1 %vm33_vm0, %v349_v8  ;;  %484 = vmatprep.mubr.msk.f32.mxu1 %vm541_vm2, %v540_v9 }
  0xa2   :  { %v650_v48 = vsub.f32 %v32_v13, %v75_v45  ;;  %v90_v50 = vsel %vm33_vm0, %v82_v46, 0.0  ;;  %v114_v51 = vsel %vm33_vm0, %v106_v47, 0.0  ;;  %v680_v61 = vsub.f32 %v615_v12, %v75_v45 }
  0xa3   :  { %112 = vadd.xlane.f32.xlu1 %v111_v49  ;;  %91 = vadd.xlane.f32.xlu0 %v90_v50 }
  0xa4   :  { %v83_v52 = vmul.f32 %v650_v48, %v650_v48  ;;  %v107_v62 = vmul.f32 %v680_v61, %v680_v61 }
  0xa5   :  { %494 = vmatpush3.bf16.xpose.msk.msra.mxu0 %vm489_vm1, %v492_v7 }
  0xa6   :  { %v93_v53 = vsel %vm33_vm0, %v83_v52, 0.0  ;;  %v117_v63 = vsel %vm33_vm0, %v107_v62, 0.0 }
  0xa7   :  { %115 = vadd.xlane.f32.xlu1 %v114_v51  ;;  %94 = vadd.xlane.f32.xlu0 %v93_v53 }
  0xb8   :  { %155 = vperm.xlu1 %501, %v137_v54  }
  0xbc   :  { %160 = vperm.xlu1 %501, %v138_v55  }
  0xbd   :  { %150 = vperm.xlu0 %500, %v136_v56  }
  0xc0   :  { %174 = vperm.xlu1 %501, %v140_v57  }
  0xc4   :  { %179 = vperm.xlu1 %501, %v141_v58  }
  0xc8   :  { %165 = vperm.xlu1 %501, %v139_v59  }
  0xcc   :  { %184 = vperm.xlu1 %501, %v142_v60  }
  0xf0   :  { %118 = vadd.xlane.f32.xlu1 %v117_v63 }
 0x101   :  { %189 = vperm.xlu1 %501, %v143_v0  }
 0x128   :  { %v86_v14 = vpop.xlane.xlu0 %85 }
 0x12c   :  { %v89_v10 = vpop.xlane.xlu1 %88  ;;  %v110_v16 = vpop.xlane.xlu0 %109 }
 0x12d   :  { %v120_v19 = vadd.f32 %v110_v16, %v86_v14 }
 0x12f   :  { %v124_v25 = vmul.f32 0.015625, %v120_v19 }
 0x130   :  { %v113_v11 = vpop.xlane.xlu1 %112  ;;  %v92_v20 = vpop.xlane.xlu0 %91 }
 0x131   :  { %v121_v18 = vadd.f32 %v113_v11, %v89_v10  ;;  %v128_v29 = vadd.f32 1e-05, %v124_v25 }
 0x133   :  { %v125_v21 = vmul.f32 0.015625, %v121_v18 }
 0x134   :  { %v116_v12 = vpop.xlane.xlu1 %115  ;;  %v95_v35 = vpop.xlane.xlu0 %94 }
 0x135   :  { %v122_v22 = vadd.f32 %v116_v12, %v92_v20  ;;  %v129_v27 = vadd.f32 1e-05, %v125_v21 }
 0x137   :  { %v126_v28 = vmul.f32 0.015625, %v122_v22  ;;  %502 = vrsqrt.f32 %v129_v27 }
 0x138   :  { %v156_v13 = vpop.permute.xlu1 %155  ;;  %504 = vrsqrt.f32 %v128_v29 }
 0x139   :  { %v130_v33 = vadd.f32 1e-05, %v126_v28 }
 0x13b   :  { %506 = vrsqrt.f32 %v130_v33 }
 0x13c   :  { %v161_v15 = vpop.permute.xlu1 %160  ;;  %v151_v50 = vpop.permute.xlu0 %150 }
 0x140   :  { %v175_v17 = vpop.permute.xlu1 %174 }
 0x141   :  { %v503_v37 = vpop.eup %502 }
 0x142   :  { %v505_v39 = vpop.eup %504  ;;  %v145_v43 = vmul.f32 %v503_v37, %v631_v31  ;;  %v214_v44 = vmul.f32 %v503_v37, %v633_v32 }
 0x143   :  { %v144_v46 = vmul.f32 %v505_v39, %v623_v23  ;;  %v213_v47 = vmul.f32 %v505_v39, %v625_v24 }
 0x144   :  { %v180_v26 = vpop.permute.xlu1 %179  ;;  %v169_v51 = vmul.f32 %v156_v13, %v145_v43  ;;  %v218_v52 = vmul.f32 %v214_v44, %v156_v13  ;;  %v454_v44 = vld [vmem:[%s749_s4] ss:$0 sm:$0xff] }
 0x145   :  { %v507_v45 = vpop.eup %506  ;;  %v168_v55 = vmul.f32 %v151_v50, %v144_v46  ;;  %v217_v56 = vmul.f32 %v213_v47, %v151_v50 }
 0x146   :  { %v146_v53 = vmul.f32 %v507_v45, %v641_v41  ;;  %v215_v54 = vmul.f32 %v507_v45, %v643_v42  ;;  %v193_v58 = vadd.f32 %v180_v26, %v169_v51  ;;  %v222_v32 = vadd.f32 %v218_v52, %v180_v26  ;;  %v461_v45 = vld [vmem:[%s751_s6] ss:$0 sm:$0xff] }
 0x147   :  { %v192_v59 = vadd.f32 %v175_v17, %v168_v55  ;;  %v221_v60 = vadd.f32 %v217_v56, %v175_v17 }
 0x148   :  { %v166_v30 = vpop.permute.xlu1 %165  ;;  %v170_v57 = vmul.f32 %v161_v15, %v146_v53  ;;  %v219_v31 = vmul.f32 %v215_v54, %v161_v15  ;;  %v197_v24 = vmax.f32 %v193_v58, 0.0  ;;  %v226_v63 = vmax.f32 %v222_v32, 0.0 }
 0x149   :  { %v196_v1 = vmax.f32 %v192_v59, 0.0  ;;  %v225_v2 = vmax.f32 %v221_v60, 0.0 }
 0x14a   :  { %v201_v5 = vsel %vm33_vm0, %v197_v24, 0.0  ;;  %v230_v6 = vsel %vm33_vm0, %v226_v63, 0.0 }
 0x14b   :  { %v200_v9 = vsel %vm33_vm0, %v196_v1, 0.0  ;;  %v229_v10 = vsel %vm33_vm0, %v225_v2, 0.0 }
 0x14c   :  { %v185_v34 = vpop.permute.xlu1 %184  ;;  %v231_v16 = vadd.f32 %v230_v6, %v229_v10 }
 0x14d   :  { %v194_v23 = vadd.f32 %v185_v34, %v170_v57  ;;  %v223_v62 = vadd.f32 %v219_v31, %v185_v34 }
 0x14f   :  { %v198_v3 = vmax.f32 %v194_v23, 0.0  ;;  %v227_v4 = vmax.f32 %v223_v62, 0.0 }
 0x151   :  { %v203_v12 = vsel %vm33_vm0, %v198_v3, 0.0  ;;  %v232_v13 = vsel %vm33_vm0, %v227_v4, 0.0 }
 0x152   :  { %v233_v19 = vadd.f32 %v232_v13, %v231_v16 }
 0x17d   :  { %v119_v36 = vpop.xlane.xlu1 %118 }
 0x17e   :  { %v123_v38 = vadd.f32 %v119_v36, %v95_v35 }
 0x180   :  { %v127_v40 = vmul.f32 0.015625, %v123_v38 }
 0x181   :  { %v190_v11 = vpop.permute.xlu1 %189 }
 0x182   :  { %v131_v49 = vadd.f32 1e-05, %v127_v40 }
 0x184   :  { %508 = vrsqrt.f32 %v131_v49 }
 0x18e   :  { %v509_v0 = vpop.eup %508 }
 0x18f   :  { %v147_v41 = vmul.f32 %v509_v0, %v650_v48  ;;  %v216_v42 = vmul.f32 %v509_v0, %v680_v61  ;;  %v202_v48 = vadd.f32 %v201_v5, %v200_v9 }
 0x191   :  { %v171_v7 = vmul.f32 %v166_v30, %v147_v41  ;;  %v220_v8 = vmul.f32 %v216_v42, %v166_v30  ;;  %v204_v18 = vadd.f32 %v203_v12, %v202_v48 }
 0x193   :  { %v195_v14 = vadd.f32 %v190_v11, %v171_v7  ;;  %v224_v15 = vadd.f32 %v220_v8, %v190_v11 }
 0x195   :  { %v199_v61 = vmax.f32 %v195_v14, 0.0  ;;  %v228_v17 = vmax.f32 %v224_v15, 0.0 }
 0x197   :  { %v205_v20 = vsel %vm33_vm0, %v199_v61, 0.0  ;;  %v234_v21 = vsel %vm33_vm0, %v228_v17, 0.0 }
 0x198   :  { %v206_v22 = vadd.f32 %v205_v20, %v204_v18  ;;  %v235_v25 = vadd.f32 %v234_v21, %v233_v19 }
 0x19a   :  { %v207_v26 = vrot.slane %v206_v22, 4  ;;  %v236_v27 = vrot.slane %v235_v25, 4 }
 0x19c   :  { %v208_v28 = vadd.f32 %v207_v26, %v206_v22  ;;  %v237_v29 = vadd.f32 %v236_v27, %v235_v25 }
 0x19e   :  { %v209_v30 = vrot.slane %v208_v28, 2  ;;  %v238_v33 = vrot.slane %v237_v29, 2 }
 0x1a0   :  { %v210_v34 = vadd.f32 %v209_v30, %v208_v28  ;;  %v239_v35 = vadd.f32 %v238_v33, %v237_v29 }
 0x1a2   :  { %v211_v36 = vrot.slane %v210_v34, 1  ;;  %v240_v37 = vrot.slane %v239_v35, 1 }
 0x1a4   :  { %v212_v38 = vadd.f32 %v211_v36, %v210_v34  ;;  %v241_v39 = vadd.f32 %v240_v37, %v239_v35 }
 0x1a6   :  { %v243_v40 = vsel %vm242_vm3, %v212_v38, %v241_v39 }
 0x1a7   :  { %v244_v43 = vmul.f32 0.03125, %v243_v40 }
 0x1a9   :  { %480 = vmatmul.mubr.msk.f32.vlgmr.msra.gmra.mrb[0].mxu0 %vm33_vm0, %v244_v43  ;;  %485 = vmatmul.mubr.msk.f32.vlgmr.msra.gmra.mrb[0].mxu1 %vm33_vm0, %v244_v43 }
 0x27c   :  { %v337_v46 = vpop.f32.mrb[0].mxu0  ;;  %v426_v47 = vpop.f32.mrb[0].mxu1 }
 0x27d   :  { %v338_v49 = vadd.f32 %v454_v44, %v337_v46  ;;  %v427_v50 = vadd.f32 %v461_v45, %v426_v47  ;;  %v481_v51 = vpop.f32.mrb[1].mxu0  ;;  %v486_v52 = vpop.f32.mrb[1].mxu1 }
 0x27f   :  { %v460_v53 = vmul.f32 -1.442695, %v338_v49  ;;  %431 = vst.msk [vmem:[#allocation2] sm:$0x3] %vm430_vm4, %v427_v50 }
 0x280   :  { %525 = shalt.err (!%p522_p4)
}
 0x281   :  { %s526_s26 = scalar_lea.hbm %s753_s8, 32 }
 0x282   :  { %p527_p5 = scmp.ne.s32.totalorder %s753_s8, %s526_s26  ;;  %p530_p6 = scmp.lt.u32.totalorder %s526_s26, %s753_s8 }
 0x284   :  { %p532_p7 = pnand %p530_p6, %p527_p5 }
 0x286   :  { %535 = shalt.err (!%p532_p7)
}
 0x287   :  { %443 = dma.vmem_to_hbm [thread:$0]  %s441_s24, 32, %s753_s8, [#allocation3]   ;;  %510 = vpow2.f32 %v460_v53  ;;  %vm347_vm5 = vcmask 254976  }
 0x291   :  { %v511_v54 = vpop.eup %510 }
 0x292   :  { %v344_v55 = vadd.f32 1.0, %v511_v54 }
 0x294   :  { %512 = vrcp.f32 %v344_v55 }
 0x29e   :  { %v513_v56 = vpop.eup %512 }
 0x29f   :  { %348 = vst.msk [vmem:[%s752_s7] sm:$0x3] %vm347_vm5, %v513_v56 }
 0x2a0   :  { %536 = dma.done.wait [#allocation3], 32  }
 0x2a1   :  { %537 = vsyncadd [#allocation3], 4294967264 }
 0x2a2   :  { %449 = vsyncpa [#allocation3], 1 }

// kernel: enc_module_forward.5
= control target key start
LH: loop header
LB: loop body
LE: loop exit
PB: predicated region body
PF: predicated region fallthrough
CT: control target
= control target key end

     0   :  { %s960_s21 = smov 0   ;;  %s962_s22 = smov 0   ;;  %s1117_s0 = inlined_call_operand.vmem [shape: f32[2,32,256], index: 0, kind: input, shape index: {}]   ;;  %s1118_s1 = inlined_call_operand.vmem [shape: f32[32,32], index: 1, kind: input, shape index: {}]   ;;  %s1119_s2 = inlined_call_operand.vmem [shape: f32[32,1], index: 2, kind: input, shape index: {}]   ;;  %s1120_s3 = inlined_call_operand.vmem [shape: f32[32,1], index: 3, kind: input, shape index: {}]   ;;  %s1121_s4 = inlined_call_operand.vmem [shape: f32[32,32], index: 4, kind: input, shape index: {}]   ;;  %s1122_s5 = inlined_call_operand.vmem [shape: f32[32,1], index: 5, kind: input, shape index: {}]   ;;  %s1123_s6 = inlined_call_operand.vmem [shape: f32[2,32,32], index: 6, kind: output, shape index: {}]  }
   0x1   :  { %s964_s23 = smov 0  }
   0x2 LB: > { %s28_s24 = sadd.s32 1, %s917_s22  ;;  %p834_p0 = scmp.ge.s32.totalorder %s921_s23, 1  ;;  %s921_s23 = sphi %s964_s23, %s16_s23   ;;  %s917_s22 = sphi %s962_s22, %s1125_s22   ;;  %s913_s21 = sphi %s960_s21, %s1124_s21  }
   0x3   : > { %p30_p1 = scmp.ge.s32.totalorder %s28_s24, 2  ;;  %p231_p2 = scmp.lt.s32.totalorder %s921_s23, 3 }
   0x5   : > { %s1127_s24 = smov (%p30_p1, %s28_s24), 0  ;;  %p232_p3 = pnand %p834_p0, %p231_p2 }
   0x6   : > { %p266_p4 = scmp.lt.s32.totalorder (!%p232_p3), %s913_s21, 1  ;;  %v923_v0 = vmov (!%p232_p3), 0   ;;  %v391_v1 = vld [vmem:[%s1120_s3] sm:$0xff] (!%p232_p3)  ;;  %v392_v3 = vld [vmem:[%s1120_s3 + $0x8] sm:$0xff] (!%p232_p3)  ;;  %v362_v5 = vld [vmem:[%s1119_s2 + $0x18] sm:$0xff] (!%p232_p3)  ;;  %vm299_vm0 = vcmask (!%p232_p3), 261120  }
   0x7   : > { %235 = sbr.rel (%p232_p3) target bundleno = 782 (0x30e), region = 44  ;;  %338 = vmatprep.mubr.bf16.mxu0 (!%p232_p3), %v923_v0  ;;  %878 = vset.pattern.permute.xlu1 (!%p232_p3), %v923_v0  ;;  %v359_v2 = vld [vmem:[%s1119_s2] sm:$0xff] (!%p232_p3)  ;;  %v360_v4 = vld [vmem:[%s1119_s2 + $0x8] sm:$0xff] (!%p232_p3)  ;;  %v361_v17 = vld [vmem:[%s1119_s2 + $0x10] sm:$0xff] (!%p232_p3) }
   0x8   : > { %397 = vperm.xlu1 (!%p232_p3), %878, %v391_v1   ;;  %877 = vset.pattern.permute.xlu0 (!%p232_p3), %v923_v0  ;;  %v281_v19 = vld [vmem:[%s1118_s1] sm:$0xff] (!%p232_p3)  ;;  %v282_v20 = vld [vmem:[%s1118_s1 + $0x8] sm:$0xff] (!%p232_p3)  ;;  %v394_v21 = vld [vmem:[%s1120_s3 + $0x18] sm:$0xff] (!%p232_p3) }
   0x9   : > { %365 = vperm.xlu0 (!%p232_p3), %877, %v359_v2   ;;  %521 = vmatprep.mubr.bf16.mxu1 (!%p232_p3), %v923_v0  ;;  %v393_v22 = vld [vmem:[%s1120_s3 + $0x10] sm:$0xff] (!%p232_p3)  ;;  %v285_v23 = vpack.c.bf16 (!%p232_p3), %v282_v20, %v281_v19  ;;  %v284_v25 = vld [vmem:[%s1118_s1 + $0x18] sm:$0xff] (!%p232_p3)  ;;  %v1030_v27 = vld [vmem:[%s1121_s4] sm:$0xff] (!%p232_p3) }
   0xa   : > { %v283_v24 = vld [vmem:[%s1118_s1 + $0x10] sm:$0xff] (!%p232_p3)  ;;  %v465_v28 = vmul.f32 (!%p232_p3), %v1030_v27, %v1030_v27  ;;  %v1037_v29 = vld [vmem:[%s1121_s4 + $0x8] sm:$0xff] (!%p232_p3)  ;;  %v1052_v34 = vld [vmem:[%s1121_s4 + $0x18] sm:$0xff] (!%p232_p3) }
   0xb   : > { %v286_v26 = vpack.c.bf16 (!%p232_p3), %v284_v25, %v283_v24  ;;  %v1042_v30 = vld [vmem:[%s1121_s4 + $0x10] sm:$0xff] (!%p232_p3)  ;;  %v466_v32 = vmul.f32 (!%p232_p3), %v1037_v29, %v1037_v29  ;;  %v468_v37 = vmul.f32 (!%p232_p3), %v1052_v34, %v1052_v34  ;;  %v542_v39 = vld [vmem:[%s1122_s5] sm:$0xff] (!%p232_p3)  ;;  %v545_v41 = vld [vmem:[%s1122_s5 + $0x18] sm:$0xff] (!%p232_p3) }
   0xc   : > { %402 = vperm.xlu1 (!%p232_p3), %878, %v392_v3   ;;  %v469_v31 = vsel (!%p232_p3), %vm299_vm0, %v465_v28, 0.0  ;;  %v467_v33 = vmul.f32 (!%p232_p3), %v1042_v30, %v1042_v30  ;;  %v544_v40 = vld [vmem:[%s1122_s5 + $0x10] sm:$0xff] (!%p232_p3)  ;;  %v543_v42 = vld [vmem:[%s1122_s5 + $0x8] sm:$0xff] (!%p232_p3) }
   0xd   : > { %370 = vperm.xlu0 (!%p232_p3), %877, %v360_v4   ;;  %v472_v35 = vsel (!%p232_p3), %vm299_vm0, %v466_v32, 0.0  ;;  %v478_v38 = vsel (!%p232_p3), %vm299_vm0, %v468_v37, 0.0 }
   0xe   : > { %s1129_s21 = smov (!%p266_p4, %s913_s21), 1  ;;  %v475_v36 = vsel %vm299_vm0, %v467_v33, 0.0 }
   0xf   : > { %s845_s7 = sshll.u32 %s1129_s21, 6  ;;  %s846_s29 = sshll.u32 %s1129_s21, 5 }
  0x10   : > { %s273_s12 = scalar_lea.vmem %s1117_s0, %s845_s7  ;;  %380 = vperm.xlu1 %878, %v362_v5   ;;  %s1082_s8 = scalar_lea.vmem %s1123_s6, %s846_s29 }
  0x11   : > { %v288_v6 = vld [vmem:[%s273_s12 + $0x8] sm:$0xff]  ;;  %v290_v7 = vld [vmem:[%s273_s12 + $0x18] sm:$0xff]  ;;  %v287_v8 = vld [vmem:[%s273_s12] sm:$0xff]  ;;  %375 = vperm.xlu0 %877, %v361_v17  }
  0x12   : > { %v296_v9 = vpack.c.bf16 %v290_v7, %v288_v6  ;;  %v289_v10 = vld [vmem:[%s273_s12 + $0x10] sm:$0xff]  ;;  %v292_v11 = vld [vmem:[%s273_s12 + $0x28] sm:$0xff]  ;;  %v294_v12 = vld [vmem:[%s273_s12 + $0x38] sm:$0xff] }
  0x13   : > { %v295_v13 = vpack.c.bf16 %v289_v10, %v287_v8  ;;  %v298_v14 = vpack.c.bf16 %v294_v12, %v292_v11  ;;  %v291_v15 = vld [vmem:[%s273_s12 + $0x20] sm:$0xff]  ;;  %v293_v16 = vld [vmem:[%s273_s12 + $0x30] sm:$0xff] }
  0x14   : > { %306 = vmatprep.subr.bf16.mxu0 %v296_v9  ;;  %v297_v18 = vpack.c.bf16 %v293_v16, %v291_v15  ;;  %412 = vperm.xlu1 %878, %v394_v21  }
  0x15   : > { %307 = vmatpush1.bf16.msra.mxu0 %v295_v13  ;;  %407 = vperm.xlu0 %877, %v393_v22  }
  0x16   : > { %308 = vmatprep.subr.bf16.mxu0 %v298_v14 }
  0x19   : > { %309 = vmatpush1.bf16.msra.mxu0 %v297_v18 }
  0x1c   : > { %839 = vmatmul.mubr.msk.bf16.vlgmr.msra.gmra.mrb[0].mxu0 %vm299_vm0, %v285_v23 }
  0x1d   : > { %348 = vmatprep.mubr.bf16.mxu0 %v923_v0 }
  0x24   : > { %840 = vmatmul.mubr.msk.bf16.gmra.mrb[4].mxu0 %vm299_vm0, %v286_v26 }
  0x34   : > { %470 = vadd.xlane.f32.xlu0 %v469_v31 }
  0x38   : > { %473 = vadd.xlane.f32.xlu1 %v472_v35  ;;  %476 = vadd.xlane.f32.xlu0 %v475_v36 }
  0x3c   : > { %479 = vadd.xlane.f32.xlu0 %v478_v38 }
  0x49   : > { %572 = vperm.xlu1 %878, %v542_v39  }
  0x4d   : > { %582 = vperm.xlu1 %878, %v544_v40  }
  0x51   : > { %587 = vperm.xlu1 %878, %v545_v41   ;;  %v481_v41 = vpack.c.bf16 %v1037_v29, %v1030_v27 }
  0x52   : > { %577 = vperm.xlu0 %877, %v543_v42  }
  0x87   : > { %v398_v44 = vpop.permute.xlu1 %397 }
  0x88   : > { %v366_v43 = vpop.permute.xlu0 %365 }
  0x8b   : > { %v403_v46 = vpop.permute.xlu1 %402 }
  0x8c   : > { %v371_v45 = vpop.permute.xlu0 %370 }
  0x8f   : > { %v381_v60 = vpop.permute.xlu1 %380 }
  0x90   : > { %v376_v55 = vpop.permute.xlu0 %375 }
  0x93   : > { %v413_v18 = vpop.permute.xlu1 %412 }
  0x94   : > { %v408_v8 = vpop.permute.xlu0 %407 }
  0xef   : > { %v340_v47 = vpop.f32.mrb[0].mxu0 }
  0xf0   : > { %v383_v48 = vmul.f32 %v366_v43, %v340_v47  ;;  %v342_v49 = vpop.f32.mrb[1].mxu0 }
  0xf1   : > { %v384_v50 = vmul.f32 %v366_v43, %v342_v49  ;;  %v344_v51 = vpop.f32.mrb[2].mxu0  ;;  %v482_v43 = vpack.c.bf16 %v1052_v34, %v1042_v30 }
  0xf2   : > { %v415_v52 = vadd.f32 %v398_v44, %v383_v48  ;;  %v385_v53 = vmul.f32 %v371_v45, %v344_v51  ;;  %v346_v54 = vpop.f32.mrb[3].mxu0 }
  0xf3   : > { %v416_v56 = vadd.f32 %v398_v44, %v384_v50  ;;  %v386_v57 = vmul.f32 %v371_v45, %v346_v54  ;;  %v474_v54 = vpop.xlane.xlu1 %473 }
  0xf4   : > { %v423_v58 = vmax.f32 %v415_v52, 0.0  ;;  %v417_v59 = vadd.f32 %v403_v46, %v385_v53  ;;  %v471_v52 = vpop.xlane.xlu0 %470 }
  0xf5   : > { %v424_v61 = vmax.f32 %v416_v56, 0.0  ;;  %v418_v62 = vadd.f32 %v403_v46, %v386_v57 }
  0xf6   : > { %v425_v63 = vmax.f32 %v417_v59, 0.0  ;;  %v439_v3 = vmul.f32 %v423_v58, %v423_v58 }
  0xf7   : > { %v426_v1 = vmax.f32 %v418_v62, 0.0  ;;  %v350_v2 = vpop.f32.mrb[4].mxu0  ;;  %v440_v9 = vmul.f32 %v424_v61, %v424_v61 }
  0xf8   : > { %v441_v4 = vmul.f32 %v425_v63, %v425_v63  ;;  %v387_v5 = vmul.f32 %v376_v55, %v350_v2  ;;  %v352_v6 = vpop.f32.mrb[5].mxu0  ;;  %v435_v7 = vpack.c.bf16 %v425_v63, %v423_v58  ;;  %v477_v62 = vpop.xlane.xlu0 %476 }
  0xf9   : > { %v442_v10 = vmul.f32 %v426_v1, %v426_v1  ;;  %v388_v11 = vmul.f32 %v376_v55, %v352_v6  ;;  %v354_v12 = vpop.f32.mrb[6].mxu0  ;;  %v436_v13 = vpack.c.bf16 %v426_v1, %v424_v61 }
  0xfa   : > { %v447_v14 = vadd.f32 %v441_v4, %v439_v3  ;;  %v419_v15 = vadd.f32 %v408_v8, %v387_v5  ;;  %v389_v16 = vmul.f32 %v381_v60, %v354_v12  ;;  %v356_v17 = vpop.f32.mrb[7].mxu0  ;;  %v573_v3 = vpop.permute.xlu1 %572 }
  0xfb   : > { %v456_v19 = vadd.f32 %v442_v10, %v440_v9  ;;  %v420_v20 = vadd.f32 %v408_v8, %v388_v11  ;;  %v390_v21 = vmul.f32 %v381_v60, %v356_v17  ;;  %489 = vmatprep.subr.bf16.mxu1 %v436_v13  ;;  %672 = vmatprep.subr.bf16.mxu0 %v436_v13 }
  0xfc   : > { %v427_v22 = vmax.f32 %v419_v15, 0.0  ;;  %v421_v23 = vadd.f32 %v413_v18, %v389_v16  ;;  %490 = vmatpush1.bf16.msra.mxu1 %v435_v7  ;;  %673 = vmatpush1.bf16.xpose.msra.mxu0 %v435_v7  ;;  %v480_v9 = vpop.xlane.xlu0 %479 }
  0xfd   : > { %v428_v24 = vmax.f32 %v420_v20, 0.0  ;;  %v422_v25 = vadd.f32 %v413_v18, %v390_v21 }
  0xfe   : > { %v443_v26 = vmul.f32 %v427_v22, %v427_v22  ;;  %v429_v28 = vmax.f32 %v421_v23, 0.0  ;;  %v583_v12 = vpop.permute.xlu1 %582 }
  0xff   : > { %v444_v31 = vmul.f32 %v428_v24, %v428_v24  ;;  %v430_v32 = vmax.f32 %v422_v25, 0.0 }
 0x100   : > { %v448_v33 = vadd.f32 %v447_v14, %v443_v26  ;;  %v445_v35 = vmul.f32 %v429_v28, %v429_v28  ;;  %v437_v36 = vpack.c.bf16 %v429_v28, %v427_v22 }
 0x101   : > { %v457_v37 = vadd.f32 %v456_v19, %v444_v31  ;;  %v446_v38 = vmul.f32 %v430_v32, %v430_v32  ;;  %v438_v39 = vpack.c.bf16 %v430_v32, %v428_v24 }
 0x102   : > { %v449_v40 = vadd.f32 %v448_v33, %v445_v35  ;;  %v588_v35 = vpop.permute.xlu1 %587 }
 0x103   : > { %v458_v42 = vadd.f32 %v457_v37, %v446_v38  ;;  %491 = vmatprep.subr.bf16.mxu1 %v438_v39  ;;  %674 = vmatprep.subr.bf16.mxu0 %v438_v39 }
 0x104   : > { %492 = vmatpush1.bf16.msra.mxu1 %v437_v36  ;;  %675 = vmatpush1.bf16.xpose.msra.mxu0 %v437_v36  ;;  %v450_v44 = vrot.slane %v449_v40, 4 }
 0x105   : > { %847 = vmatprep.subr.bf16.mxu1 %v436_v13  ;;  %v459_v45 = vrot.slane %v458_v42, 4 }
 0x106   : > { %v451_v46 = vadd.f32 %v450_v44, %v449_v40 }
 0x107   : > { %841 = vmatmul.mubr.msk.bf16.vlgmr.msra.gmra.mrb[0].mxu1 %vm299_vm0, %v481_v41  ;;  %v460_v47 = vadd.f32 %v459_v45, %v458_v42 }
 0x108   : > { %531 = vmatprep.mubr.bf16.mxu1 %v923_v0  ;;  %v452_v48 = vrot.slane %v451_v46, 2 }
 0x109   : > { %v461_v49 = vrot.slane %v460_v47, 2 }
 0x10a   : > { %v453_v50 = vadd.f32 %v452_v48, %v451_v46 }
 0x10b   : > { %v462_v51 = vadd.f32 %v461_v49, %v460_v47 }
 0x10c   : > { %v454_v53 = vrot.slane %v453_v50, 1 }
 0x10d   : > { %849 = vmatpush1.bf16.xpose.msra.mxu1 %v435_v7  ;;  %v463_v0 = vrot.slane %v462_v51, 1 }
 0x10e   : > { %848 = vmatprep.subr.bf16.mxu1 %v438_v39  ;;  %v455_v56 = vadd.f32 %v454_v53, %v453_v50 }
 0x10f   : > { %842 = vmatmul.mubr.msk.bf16.gmra.mrb[4].mxu1 %vm299_vm0, %v482_v43  ;;  %v464_v59 = vadd.f32 %v463_v0, %v462_v51 }
 0x115   : > { %850 = vmatpush1.bf16.xpose.msra.mxu1 %v437_v36  ;;  %v578_v36 = vpop.permute.xlu0 %577 }
 0x1da   : > { %v523_v55 = vpop.f32.mrb[0].mxu1 }
 0x1db   : > { %v546_v57 = vmul.f32 2.0, %v523_v55  ;;  %v525_v58 = vpop.f32.mrb[1].mxu1 }
 0x1dc   : > { %v547_v60 = vmul.f32 2.0, %v525_v58  ;;  %v527_v61 = vpop.f32.mrb[2].mxu1 }
 0x1dd   : > { %v554_v63 = vsub.f32 %v455_v56, %v546_v57  ;;  %v548_v1 = vmul.f32 2.0, %v527_v61  ;;  %v529_v2 = vpop.f32.mrb[3].mxu1 }
 0x1de   : > { %v555_v4 = vsub.f32 %v464_v59, %v547_v60  ;;  %v549_v5 = vmul.f32 2.0, %v529_v2 }
 0x1df   : > { %v556_v6 = vsub.f32 %v455_v56, %v548_v1  ;;  %v562_v15 = vadd.f32 %v554_v63, %v471_v52 }
 0x1e0   : > { %v557_v7 = vsub.f32 %v464_v59, %v549_v5  ;;  %v563_v19 = vadd.f32 %v555_v4, %v471_v52 }
 0x1e1   : > { %v564_v22 = vadd.f32 %v556_v6, %v474_v54  ;;  %v590_v31 = vmul.f32 %v573_v3, %v562_v15 }
 0x1e2   : > { %v533_v8 = vpop.f32.mrb[4].mxu1  ;;  %v565_v25 = vadd.f32 %v557_v7, %v474_v54  ;;  %v591_v37 = vmul.f32 %v573_v3, %v563_v19 }
 0x1e3   : > { %v550_v10 = vmul.f32 2.0, %v533_v8  ;;  %v535_v11 = vpop.f32.mrb[5].mxu1  ;;  %v592_v40 = vmul.f32 %v578_v36, %v564_v22 }
 0x1e4   : > { %v551_v13 = vmul.f32 2.0, %v535_v11  ;;  %v537_v14 = vpop.f32.mrb[6].mxu1  ;;  %v593_v43 = vmul.f32 %v578_v36, %v565_v25 }
 0x1e5   : > { %v558_v16 = vsub.f32 %v455_v56, %v550_v10  ;;  %v552_v17 = vmul.f32 2.0, %v537_v14  ;;  %v539_v18 = vpop.f32.mrb[7].mxu1 }
 0x1e6   : > { %v559_v20 = vsub.f32 %v464_v59, %v551_v13  ;;  %v553_v21 = vmul.f32 2.0, %v539_v18 }
 0x1e7   : > { %v566_v23 = vadd.f32 %v558_v16, %v477_v62  ;;  %v560_v24 = vsub.f32 %v455_v56, %v552_v17 }
 0x1e8   : > { %v567_v26 = vadd.f32 %v559_v20, %v477_v62  ;;  %v561_v28 = vsub.f32 %v464_v59, %v553_v21 }
 0x1e9   : > { %v594_v32 = vmul.f32 %v583_v12, %v566_v23  ;;  %v568_v33 = vadd.f32 %v560_v24, %v480_v9 }
 0x1ea   : > { %v595_v38 = vmul.f32 %v583_v12, %v567_v26  ;;  %v569_v39 = vadd.f32 %v561_v28, %v480_v9 }
 0x1eb   : > { %v598_v41 = vmax.f32 %v590_v31, %v594_v32  ;;  %v596_v42 = vmul.f32 %v588_v35, %v568_v33 }
 0x1ec   : > { %v607_v44 = vmax.f32 %v591_v37, %v595_v38  ;;  %v597_v45 = vmul.f32 %v588_v35, %v569_v39 }
 0x1ed   : > { %v599_v46 = vmax.f32 %v592_v40, %v596_v42 }
 0x1ee   : > { %v608_v47 = vmax.f32 %v593_v43, %v597_v45 }
 0x1ef   : > { %v600_v48 = vmax.f32 %v598_v41, %v599_v46 }
 0x1f0   : > { %v609_v49 = vmax.f32 %v607_v44, %v608_v47 }
 0x1f1   : > { %v601_v50 = vrot.slane %v600_v48, 4 }
 0x1f2   : > { %v610_v51 = vrot.slane %v609_v49, 4 }
 0x1f3   : > { %v602_v52 = vmax.f32 %v600_v48, %v601_v50 }
 0x1f4   : > { %v611_v53 = vmax.f32 %v609_v49, %v610_v51 }
 0x1f5   : > { %v603_v54 = vrot.slane %v602_v52, 2 }
 0x1f6   : > { %v612_v0 = vrot.slane %v611_v53, 2 }
 0x1f7   : > { %v604_v55 = vmax.f32 %v602_v52, %v603_v54 }
 0x1f8   : > { %v613_v56 = vmax.f32 %v611_v53, %v612_v0 }
 0x1f9   : > { %v605_v57 = vrot.slane %v604_v55, 1 }
 0x1fa   : > { %v614_v58 = vrot.slane %v613_v56, 1 }
 0x1fb   : > { %v606_v59 = vmax.f32 %v604_v55, %v605_v57 }
 0x1fc   : > { %v615_v60 = vmax.f32 %v613_v56, %v614_v58 }
 0x1fd   : > { %v616_v61 = vsub.f32 %v590_v31, %v606_v59  ;;  %v620_v62 = vsub.f32 %v594_v32, %v606_v59  ;;  %v622_v63 = vsub.f32 %v596_v42, %v606_v59  ;;  %v618_v1 = vsub.f32 %v592_v40, %v606_v59 }
 0x1fe   : > { %v617_v2 = vsub.f32 %v591_v37, %v615_v60  ;;  %v619_v3 = vsub.f32 %v593_v43, %v615_v60  ;;  %v623_v4 = vsub.f32 %v597_v45, %v615_v60  ;;  %v621_v5 = vsub.f32 %v595_v38, %v615_v60 }
 0x1ff   : > { %v624_v8 = vmul.f32 1.442695, %v616_v61  ;;  %v628_v10 = vmul.f32 1.442695, %v618_v1  ;;  %v632_v12 = vmul.f32 1.442695, %v620_v62 }
 0x200   : > { %v626_v6 = vmul.f32 1.442695, %v617_v2  ;;  %v630_v7 = vmul.f32 1.442695, %v619_v3  ;;  %v634_v9 = vmul.f32 1.442695, %v621_v5 }
 0x201   : > { %v638_v11 = vmul.f32 1.442695, %v623_v4  ;;  %v636_v13 = vmul.f32 1.442695, %v622_v63  ;;  %v924_v61 = vmov 0.0  }
 0x202   : > { %879 = vpow2.f32 %v626_v6  ;;  %737 = vst.msk [vmem:[%s1082_s8] sm:$0xff] %vm299_vm0, %v924_v61  ;;  %738 = vst.msk [vmem:[%s1082_s8 + $0x8] sm:$0xff] %vm299_vm0, %v924_v61 }
 0x203   : > { %881 = vpow2.f32 %v630_v7  ;;  %739 = vst.msk [vmem:[%s1082_s8 + $0x10] sm:$0xff] %vm299_vm0, %v924_v61  ;;  %740 = vst.msk [vmem:[%s1082_s8 + $0x18] sm:$0xff] %vm299_vm0, %v924_v61 }
 0x204   : > { %883 = vpow2.f32 %v624_v8 }
 0x205   : > { %885 = vpow2.f32 %v634_v9 }
 0x206   : > { %887 = vpow2.f32 %v628_v10 }
 0x207   : > { %889 = vpow2.f32 %v638_v11 }
 0x208   : > { %891 = vpow2.f32 %v632_v12 }
 0x209   : > { %893 = vpow2.f32 %v636_v13  ;;  %v741_v6 = vld [vmem:[%s1082_s8] sm:$0xff] }
 0x20a   : > { %v743_v8 = vld [vmem:[%s1082_s8 + $0x10] sm:$0xff] }
 0x20c   : > { %v880_v14 = vpop.eup %879 }
 0x20d   : > { %v882_v15 = vpop.eup %881 }
 0x20e   : > { %v884_v16 = vpop.eup %883  ;;  %v649_v17 = vadd.f32 %v882_v15, %v880_v14 }
 0x20f   : > { %v886_v18 = vpop.eup %885 }
 0x210   : > { %v888_v19 = vpop.eup %887  ;;  %v650_v20 = vadd.f32 %v886_v18, %v649_v17 }
 0x211   : > { %v890_v21 = vpop.eup %889  ;;  %v640_v22 = vadd.f32 %v888_v19, %v884_v16 }
 0x212   : > { %v892_v23 = vpop.eup %891  ;;  %v651_v24 = vadd.f32 %v890_v21, %v650_v20 }
 0x213   : > { %v641_v25 = vadd.f32 %v892_v23, %v640_v22  ;;  %v894_v26 = vpop.eup %893 }
 0x214   : > { %v652_v28 = vrot.slane %v651_v24, 4 }
 0x215   : > { %v642_v31 = vadd.f32 %v894_v26, %v641_v25 }
 0x216   : > { %v653_v32 = vadd.f32 %v652_v28, %v651_v24 }
 0x217   : > { %v643_v33 = vrot.slane %v642_v31, 4 }
 0x218   : > { %v654_v35 = vrot.slane %v653_v32, 2 }
 0x219   : > { %v644_v36 = vadd.f32 %v643_v33, %v642_v31 }
 0x21a   : > { %v655_v37 = vadd.f32 %v654_v35, %v653_v32 }
 0x21b   : > { %v645_v38 = vrot.slane %v644_v36, 2 }
 0x21c   : > { %v656_v39 = vrot.slane %v655_v37, 1 }
 0x21d   : > { %v646_v40 = vadd.f32 %v645_v38, %v644_v36 }
 0x21e   : > { %v657_v41 = vadd.f32 %v656_v39, %v655_v37 }
 0x21f   : > { %v647_v42 = vrot.slane %v646_v40, 1 }
 0x220   : > { %895 = vrcp.f32 %v657_v41 }
 0x221   : > { %v648_v43 = vadd.f32 %v647_v42, %v646_v40 }
 0x223   : > { %897 = vrcp.f32 %v648_v43 }
 0x22a   : > { %v896_v44 = vpop.eup %895 }
 0x22b   : > { %v665_v45 = vmul.f32 %v896_v44, %v886_v18  ;;  %v667_v46 = vmul.f32 %v896_v44, %v890_v21  ;;  %v663_v47 = vmul.f32 %v896_v44, %v882_v15  ;;  %v661_v48 = vmul.f32 %v896_v44, %v880_v14 }
 0x22d   : > { %v898_v49 = vpop.eup %897  ;;  %v671_v50 = vpack.c.bf16 %v667_v46, %v665_v45  ;;  %v669_v51 = vpack.c.bf16 %v663_v47, %v661_v48 }
 0x22e   : > { %v662_v52 = vmul.f32 %v898_v49, %v888_v19  ;;  %v660_v53 = vmul.f32 %v898_v49, %v884_v16  ;;  %v664_v54 = vmul.f32 %v898_v49, %v892_v23  ;;  %v666_v0 = vmul.f32 %v898_v49, %v894_v26 }
 0x22f   : > { %712 = vmatprep.mubr.bf16.mxu1 %v671_v50  ;;  %704 = vmatprep.mubr.bf16.mxu0 %v669_v51 }
 0x230   : > { %v724_v55 = vadd.f32 %v663_v47, %v662_v52  ;;  %v668_v56 = vpack.c.bf16 %v662_v52, %v660_v53  ;;  %v721_v57 = vadd.f32 %v661_v48, %v660_v53  ;;  %v670_v58 = vpack.c.bf16 %v666_v0, %v664_v54 }
 0x231   : > { %v727_v59 = vadd.f32 %v665_v45, %v664_v54  ;;  %v730_v60 = vadd.f32 %v667_v46, %v666_v0 }
 0x232   : > { %725 = vadd.xlane.f32.xlu1 %v724_v55  ;;  %722 = vadd.xlane.f32.xlu0 %v721_v57 }
 0x233   : > { %705 = vmatmul.mubr.bf16.vlgmr.msra.gmra.mrb[8].mxu0 %v668_v56  ;;  %713 = vmatmul.mubr.bf16.vlgmr.msra.gmra.mrb[8].mxu1 %v670_v58 }
 0x236   : > { %728 = vadd.xlane.f32.xlu0 %v727_v59 }
 0x23a   : > { %731 = vadd.xlane.f32.xlu0 %v730_v60 }
 0x2bf   : > { %v723_v62 = vpop.xlane.xlu0 %722  ;;  %v726_v1 = vpop.xlane.xlu1 %725 }
 0x2c0   : > { %v745_v3 = vmul.f32 %v723_v62, %v1030_v27  ;;  %v746_v9 = vmul.f32 %v726_v1, %v1037_v29  ;;  %v742_v27 = vld [vmem:[%s1082_s8 + $0x8] sm:$0xff] }
 0x2c3   : > { %v729_v63 = vpop.xlane.xlu0 %728 }
 0x2c4   : > { %v747_v4 = vmul.f32 %v729_v63, %v1042_v30  ;;  %v744_v30 = vld [vmem:[%s1082_s8 + $0x18] sm:$0xff] }
 0x2c7   : > { %v732_v2 = vpop.xlane.xlu0 %731 }
 0x2c8   : > { %v748_v10 = vmul.f32 %v732_v2, %v1052_v34 }
 0x306   : > { %v706_v5 = vpop.f32.mrb[8].mxu0  ;;  %v714_v7 = vpop.f32.mrb[8].mxu1 }
 0x307   : > { %v749_v11 = vsub.f32 %v706_v5, %v745_v3  ;;  %v751_v12 = vsub.f32 %v714_v7, %v747_v4  ;;  %v708_v13 = vpop.f32.mrb[9].mxu0  ;;  %v716_v14 = vpop.f32.mrb[9].mxu1 }
 0x308   : > { %v709_v15 = vpop.f32.mrb[10].mxu0  ;;  %v717_v16 = vpop.f32.mrb[10].mxu1 }
 0x309   : > { %v753_v17 = vadd.f32 %v749_v11, %v741_v6  ;;  %v755_v18 = vadd.f32 %v751_v12, %v743_v8  ;;  %v750_v19 = vsub.f32 %v709_v15, %v746_v9  ;;  %v752_v20 = vsub.f32 %v717_v16, %v748_v10  ;;  %v711_v21 = vpop.f32.mrb[11].mxu0  ;;  %v719_v29 = vpop.f32.mrb[11].mxu1 }
 0x30b   : > { %757 = vst.msk [vmem:[%s1082_s8] sm:$0xff] %vm299_vm0, %v753_v17  ;;  %759 = vst.msk [vmem:[%s1082_s8 + $0x10] sm:$0xff] %vm299_vm0, %v755_v18  ;;  %v754_v34 = vadd.f32 %v750_v19, %v742_v27  ;;  %v756_v22 = vadd.f32 %v752_v20, %v744_v30 }
 0x30d   : > { %758 = vst.msk [vmem:[%s1082_s8 + $0x8] sm:$0xff] %vm299_vm0, %v754_v34  ;;  %760 = vst.msk [vmem:[%s1082_s8 + $0x18] sm:$0xff] %vm299_vm0, %v756_v22 }
 0x30e PF: > { %s16_s23 = sadd.s32 1, %s921_s23   ;;  %s1124_s21 = smov %s917_s22 }
 0x30f   : > { %p13_p5 = scmp.ge.s32.totalorder %s16_s23, 4   ;;  %s1125_s22 = smov %s1127_s24 }
 0x311   :  { %15 = sbr.rel (!%p13_p5) target bundleno = 2 (0x2), region = 78 }

</bundles_post_ra>
